<compile_context>
chip_gen: v6e
topology: v6e:2x2x1
jax: 0.10.0
libtpu: 0.0.40
codegen_flags: <defaults>
</compile_context>

<pallas_src>
import jax
import jax.numpy as jnp
from jax import lax
from jax.experimental import pallas as pl
from jax.experimental.pallas import tpu as pltpu

HIDDEN = 256
MAX_TILE = 512  # 512*512*4 B = 1 MiB per output tile (2 MiB double-buffered)


def _softplus(x):
    # Matches torch.nn.Softplus(beta=1, threshold=20)
    return jnp.where(x > 20.0, x, jnp.log1p(jnp.exp(jnp.minimum(x, 20.0))))


# ----------------------------------------------------------------------------- MLP kernel
def mlp_kernel(x_ref, w1_ref, b1_ref, w2_ref, b2_ref, w3_ref, b3_ref, d_ref):
    h1 = _softplus(jnp.dot(x_ref[...], w1_ref[...],
                           preferred_element_type=jnp.float32) + b1_ref[...])
    h2 = _softplus(jnp.dot(h1, w2_ref[...],
                           preferred_element_type=jnp.float32) + b2_ref[...])
    d_ref[...] = (jnp.dot(h2, w3_ref[...],
                          preferred_element_type=jnp.float32) + b3_ref[...]
                  ).astype(d_ref.dtype)


# ------------------------------------------------------------------------ diag_embed kernel
def diag_embed_kernel(d_ref, out_ref):
    # d_ref:   (1, 1, T) -- diagonal values for this (batch, row-tile)
    # out_ref: (1, T, T) -- output tile at (batch, row-tile i, col-tile j)
    i = pl.program_id(1)
    j = pl.program_id(2)

    @pl.when(i != j)
    def _off_diag():
        out_ref[...] = jnp.zeros_like(out_ref)

    @pl.when(i == j)
    def _on_diag():
        t = out_ref.shape[-1]
        r = lax.broadcasted_iota(jnp.int32, (t, t), 0)
        c = lax.broadcasted_iota(jnp.int32, (t, t), 1)
        d_row = d_ref[0]                                   # (1, T)
        # On the diagonal r == c, so broadcasting d_row along sublanes gives
        # tile[r, c] = d[row_tile*T + r] exactly where r == c, else 0.
        tile = jnp.where(r == c, d_row, 0.0)               # (T, T)
        out_ref[...] = tile[None, :, :].astype(out_ref.dtype)


def _pick_square_tile(dim, max_tile=MAX_TILE):
    """Largest divisor of dim that is a multiple of 128 and <= max_tile, else full dim."""
    if dim <= max_tile:
        return dim
    for t in range(max_tile, 127, -128):
        if dim % t == 0:
            return t
    return dim  # fallback: full-dim blocks (always a legal block shape)


# ----------------------------------------------------------------------------- wrapper
def diagonal_s2_forward(X, params):
    """X: any shape (B, ...). Returns (B, dim, dim) with dim = prod(trailing dims)."""
    B = X.shape[0]
    x = X.reshape(B, -1).astype(jnp.float32)
    dim = x.shape[1]
    w1, b1, w2, b2, w3, b3 = params
    assert w1.shape == (dim, HIDDEN) and w3.shape == (HIDDEN, dim)

    # ---- stage 1: tiny MLP (pad batch to a multiple of 8 for MXU/sublane alignment)
    Bp = max(8, ((B + 7) // 8) * 8)
    x_p = x if Bp == B else jnp.zeros((Bp, dim), jnp.float32).at[:B].set(x)

    full = lambda shape: pl.BlockSpec(shape, lambda i: tuple(0 for _ in shape))
    # NOTE: for very large dim the (dim,256)/(256,dim) weight blocks should be tiled
    # along K/N; at the sizes used here they are a few MiB at most.
    mlp_flops = 2 * Bp * HIDDEN * (dim + HIDDEN + dim)
    d_p = pl.pallas_call(
        mlp_kernel,
        out_shape=jax.ShapeDtypeStruct((Bp, dim), jnp.float32),
        grid=(1,),
        in_specs=[
            full((Bp, dim)),          # x
            full((dim, HIDDEN)),      # w1
            full((1, HIDDEN)),        # b1
            full((HIDDEN, HIDDEN)),   # w2
            full((1, HIDDEN)),        # b2
            full((HIDDEN, dim)),      # w3
            full((1, dim)),           # b3
        ],
        out_specs=full((Bp, dim)),
        compiler_params=pltpu.CompilerParams(
            dimension_semantics=("arbitrary",),
            vmem_limit_bytes=32 * 1024 * 1024),
        cost_estimate=pl.CostEstimate(
            flops=mlp_flops,
            transcendentals=2 * Bp * HIDDEN,
            bytes_accessed=4 * (2 * Bp * dim + 2 * dim * HIDDEN
                                + HIDDEN * HIDDEN + 2 * HIDDEN + dim)),
    )(x_p, w1, b1, w2, b2, w3, b3)
    d = d_p[:B]                                   # (B, dim)

    # ---- stage 2: store-bound diag_embed with a tiled (b, i, j) grid
    T = _pick_square_tile(dim)
    n_t = dim // T
    d3 = d.reshape(B, 1, dim)                     # batch-indexable, lane-dense layout

    out = pl.pallas_call(
        diag_embed_kernel,
        out_shape=jax.ShapeDtypeStruct((B, dim, dim), jnp.float32),
        grid=(B, n_t, n_t),
        in_specs=[pl.BlockSpec((1, 1, T), lambda b, i, j: (b, 0, i))],
        out_specs=pl.BlockSpec((1, T, T), lambda b, i, j: (b, i, j)),
        compiler_params=pltpu.CompilerParams(
            dimension_semantics=("parallel", "parallel", "parallel"),
            vmem_limit_bytes=32 * 1024 * 1024),
        cost_estimate=pl.CostEstimate(
            flops=0,
            transcendentals=0,
            bytes_accessed=4 * (B * dim * dim + B * dim)),
    )(d3)
    return out


# ----------------------------------------------------------------------------- params / ref
def init_params(key, dim):
    """Deterministic init mimicking PyTorch Linear default (uniform +/- 1/sqrt(fan_in)).
    Weights stored as (in_features, out_features)."""
    ks = jax.random.split(key, 6)

    def linear(kw, kb, fan_in, fan_out):
        bound = 1.0 / jnp.sqrt(fan_in)
        w = jax.random.uniform(kw, (fan_in, fan_out), jnp.float32, -bound, bound)
        b = jax.random.uniform(kb, (1, fan_out), jnp.float32, -bound, bound)
        return w, b

    w1, b1 = linear(ks[0], ks[1], dim, HIDDEN)
    w2, b2 = linear(ks[2], ks[3], HIDDEN, HIDDEN)
    w3, b3 = linear(ks[4], ks[5], HIDDEN, dim)
    return (w1, b1, w2, b2, w3, b3)


def _reference(X, params):
    B = X.shape[0]
    x = X.reshape(B, -1).astype(jnp.float32)
    w1, b1, w2, b2, w3, b3 = params
    h = jax.nn.softplus(x @ w1 + b1)
    h = jax.nn.softplus(h @ w2 + b2)
    d = h @ w3 + b3
    eye = jnp.eye(d.shape[1], dtype=jnp.float32)
    return d[:, :, None] * eye[None]


if __name__ == "__main__":
    key = jax.random.PRNGKey(0)
    k_x, k_p = jax.random.split(key)

    # NCHW-like input: (B, C, H, W) = (2, 4, 16, 16) -> dim = 1024
    # (exercises the tiled path: T = 512, grid = (2, 2, 2), both pl.when branches)
    B, C, H, W = 2, 4, 16, 16
    dim = C * H * W
    rank = 4  # unused by forward (kept for parity with the module signature)

    X = jax.random.normal(k_x, (B, C, H, W), dtype=jnp.float32)
    params = init_params(k_p, dim)

    out = jax.block_until_ready(diagonal_s2_forward(X, params))

    ref = _reference(X, params)
    assert out.shape == (B, dim, dim)
    assert jnp.allclose(out, ref, atol=1e-4, rtol=1e-4), float(jnp.max(jnp.abs(out - ref)))

    print("KERNEL_OK")
</pallas_src>

<mosaic_0001>
module attributes {stable_mosaic.version = 11 : i64} {
  func.func @mlp_kernel(%arg0: i32, %arg1: memref<8x1024xf32, #tpu.memory_space<vmem>>, %arg2: memref<1024x256xf32, #tpu.memory_space<vmem>>, %arg3: memref<1x256xf32, #tpu.memory_space<vmem>>, %arg4: memref<256x256xf32, #tpu.memory_space<vmem>>, %arg5: memref<1x256xf32, #tpu.memory_space<vmem>>, %arg6: memref<256x1024xf32, #tpu.memory_space<vmem>>, %arg7: memref<1x1024xf32, #tpu.memory_space<vmem>>, %arg8: memref<8x1024xf32, #tpu.memory_space<vmem>>) attributes {dimension_semantics = [#tpu.dimension_semantics<arbitrary>], iteration_bounds = array<i64: 1>, scalar_prefetch = 0 : i64, scratch_operands = 0 : i64, tpu.core_type = #tpu.core_type<tc>, window_params = [{pipeline_mode = #tpu.pipeline_mode<synchronous>, transform_indices = @transform_0, window_bounds = array<i64: 8, 1024>}, {pipeline_mode = #tpu.pipeline_mode<synchronous>, transform_indices = @transform_1, window_bounds = array<i64: 1024, 256>}, {pipeline_mode = #tpu.pipeline_mode<synchronous>, transform_indices = @transform_2, window_bounds = array<i64: 1, 256>}, {pipeline_mode = #tpu.pipeline_mode<synchronous>, transform_indices = @transform_3, window_bounds = array<i64: 256, 256>}, {pipeline_mode = #tpu.pipeline_mode<synchronous>, transform_indices = @transform_4, window_bounds = array<i64: 1, 256>}, {pipeline_mode = #tpu.pipeline_mode<synchronous>, transform_indices = @transform_5, window_bounds = array<i64: 256, 1024>}, {pipeline_mode = #tpu.pipeline_mode<synchronous>, transform_indices = @transform_6, window_bounds = array<i64: 1, 1024>}, {pipeline_mode = #tpu.pipeline_mode<synchronous>, transform_indices = @transform_7, window_bounds = array<i64: 8, 1024>}]} {
    %c0 = arith.constant 0 : index
    %c0_0 = arith.constant 0 : index
    %0 = vector.load %arg1[%c0, %c0_0] : memref<8x1024xf32, #tpu.memory_space<vmem>>, vector<8x1024xf32>
    %c0_1 = arith.constant 0 : index
    %c0_2 = arith.constant 0 : index
    %1 = vector.load %arg2[%c0_1, %c0_2] : memref<1024x256xf32, #tpu.memory_space<vmem>>, vector<1024x256xf32>
    %cst = arith.constant dense<0.000000e+00> : vector<8x256xf32>
    %2 = tpu.matmul %0, %1, %cst {dimension_numbers = #tpu.dot_dimension_numbers<[1], [0], [0], [1], [0, 0, 1, 1], [], []>} : vector<8x1024xf32>, vector<1024x256xf32>, vector<8x256xf32> -> vector<8x256xf32>
    %c0_3 = arith.constant 0 : index
    %c0_4 = arith.constant 0 : index
    %3 = vector.load %arg3[%c0_3, %c0_4] : memref<1x256xf32, #tpu.memory_space<vmem>>, vector<1x256xf32>
    %4 = vector.broadcast %3 : vector<1x256xf32> to vector<8x256xf32>
    %5 = arith.addf %2, %4 : vector<8x256xf32>
    %cst_5 = arith.constant 2.000000e+01 : f32
    %6 = vector.broadcast %cst_5 : f32 to vector<8x256xf32>
    %7 = arith.cmpf ogt, %5, %6 : vector<8x256xf32>
    %cst_6 = arith.constant 2.000000e+01 : f32
    %8 = vector.broadcast %cst_6 : f32 to vector<8x256xf32>
    %9 = arith.minimumf %5, %8 : vector<8x256xf32>
    %10 = math.exp %9 : vector<8x256xf32>
    %11 = math.log1p %10 : vector<8x256xf32>
    %12 = arith.select %7, %5, %11 : vector<8x256xi1>, vector<8x256xf32>
    %c0_7 = arith.constant 0 : index
    %c0_8 = arith.constant 0 : index
    %13 = vector.load %arg4[%c0_7, %c0_8] : memref<256x256xf32, #tpu.memory_space<vmem>>, vector<256x256xf32>
    %cst_9 = arith.constant dense<0.000000e+00> : vector<8x256xf32>
    %14 = tpu.matmul %12, %13, %cst_9 {dimension_numbers = #tpu.dot_dimension_numbers<[1], [0], [0], [1], [0, 0, 1, 1], [], []>} : vector<8x256xf32>, vector<256x256xf32>, vector<8x256xf32> -> vector<8x256xf32>
    %c0_10 = arith.constant 0 : index
    %c0_11 = arith.constant 0 : index
    %15 = vector.load %arg5[%c0_10, %c0_11] : memref<1x256xf32, #tpu.memory_space<vmem>>, vector<1x256xf32>
    %16 = vector.broadcast %15 : vector<1x256xf32> to vector<8x256xf32>
    %17 = arith.addf %14, %16 : vector<8x256xf32>
    %cst_12 = arith.constant 2.000000e+01 : f32
    %18 = vector.broadcast %cst_12 : f32 to vector<8x256xf32>
    %19 = arith.cmpf ogt, %17, %18 : vector<8x256xf32>
    %cst_13 = arith.constant 2.000000e+01 : f32
    %20 = vector.broadcast %cst_13 : f32 to vector<8x256xf32>
    %21 = arith.minimumf %17, %20 : vector<8x256xf32>
    %22 = math.exp %21 : vector<8x256xf32>
    %23 = math.log1p %22 : vector<8x256xf32>
    %24 = arith.select %19, %17, %23 : vector<8x256xi1>, vector<8x256xf32>
    %c0_14 = arith.constant 0 : index
    %c0_15 = arith.constant 0 : index
    %25 = vector.load %arg6[%c0_14, %c0_15] : memref<256x1024xf32, #tpu.memory_space<vmem>>, vector<256x1024xf32>
    %cst_16 = arith.constant dense<0.000000e+00> : vector<8x1024xf32>
    %26 = tpu.matmul %24, %25, %cst_16 {dimension_numbers = #tpu.dot_dimension_numbers<[1], [0], [0], [1], [0, 0, 1, 1], [], []>} : vector<8x256xf32>, vector<256x1024xf32>, vector<8x1024xf32> -> vector<8x1024xf32>
    %c0_17 = arith.constant 0 : index
    %c0_18 = arith.constant 0 : index
    %27 = vector.load %arg7[%c0_17, %c0_18] : memref<1x1024xf32, #tpu.memory_space<vmem>>, vector<1x1024xf32>
    %28 = vector.broadcast %27 : vector<1x1024xf32> to vector<8x1024xf32>
    %29 = arith.addf %26, %28 : vector<8x1024xf32>
    %c0_19 = arith.constant 0 : index
    %c0_20 = arith.constant 0 : index
    %30 = vector.load %arg8[%c0_19, %c0_20] : memref<8x1024xf32, #tpu.memory_space<vmem>>, vector<8x1024xf32>
    tpu.vector_store %arg8[%c0_19, %c0_20], %29 {strides = array<i32>} : memref<8x1024xf32, #tpu.memory_space<vmem>>, vector<8x1024xf32>,
    return
  }
  func.func @transform_0(%arg0: i32) -> (i32, i32) {
    %c0_i32 = arith.constant 0 : i32
    %c0_i32_0 = arith.constant 0 : i32
    %c0_i32_1 = arith.constant 0 : i32
    return %c0_i32, %c0_i32_0 : i32, i32
  }
  func.func @transform_1(%arg0: i32) -> (i32, i32) {
    %c0_i32 = arith.constant 0 : i32
    %c0_i32_0 = arith.constant 0 : i32
    %c0_i32_1 = arith.constant 0 : i32
    return %c0_i32, %c0_i32_0 : i32, i32
  }
  func.func @transform_2(%arg0: i32) -> (i32, i32) {
    %c0_i32 = arith.constant 0 : i32
    %c0_i32_0 = arith.constant 0 : i32
    %c0_i32_1 = arith.constant 0 : i32
    return %c0_i32, %c0_i32_0 : i32, i32
  }
  func.func @transform_3(%arg0: i32) -> (i32, i32) {
    %c0_i32 = arith.constant 0 : i32
    %c0_i32_0 = arith.constant 0 : i32
    %c0_i32_1 = arith.constant 0 : i32
    return %c0_i32, %c0_i32_0 : i32, i32
  }
  func.func @transform_4(%arg0: i32) -> (i32, i32) {
    %c0_i32 = arith.constant 0 : i32
    %c0_i32_0 = arith.constant 0 : i32
    %c0_i32_1 = arith.constant 0 : i32
    return %c0_i32, %c0_i32_0 : i32, i32
  }
  func.func @transform_5(%arg0: i32) -> (i32, i32) {
    %c0_i32 = arith.constant 0 : i32
    %c0_i32_0 = arith.constant 0 : i32
    %c0_i32_1 = arith.constant 0 : i32
    return %c0_i32, %c0_i32_0 : i32, i32
  }
  func.func @transform_6(%arg0: i32) -> (i32, i32) {
    %c0_i32 = arith.constant 0 : i32
    %c0_i32_0 = arith.constant 0 : i32
    %c0_i32_1 = arith.constant 0 : i32
    return %c0_i32, %c0_i32_0 : i32, i32
  }
  func.func @transform_7(%arg0: i32) -> (i32, i32) {
    %c0_i32 = arith.constant 0 : i32
    %c0_i32_0 = arith.constant 0 : i32
    %c0_i32_1 = arith.constant 0 : i32
    return %c0_i32, %c0_i32_0 : i32, i32
  }
}

</mosaic_0001>

<bundles_post_ra>
// kernel: tpu_custom_call.1
= control target key start
LH: loop header
LB: loop body
LE: loop exit
PB: predicated region body
PF: predicated region fallthrough
CT: control target
= control target key end

     0   :  { %12 = vsyncpa [#allocation3], 0  ;;  %s1721_s0 = inlined_call_operand.hbm [shape: f32[8,1024], index: 0, kind: input, shape index: {}]   ;;  %s1722_s1 = inlined_call_operand.hbm [shape: f32[1024,256], index: 1, kind: input, shape index: {}]   ;;  %s1723_s2 = inlined_call_operand.vmem [shape: f32[1,256], index: 2, kind: input, shape index: {}]   ;;  %s1724_s3 = inlined_call_operand.hbm [shape: f32[256,256], index: 3, kind: input, shape index: {}]   ;;  %s1725_s4 = inlined_call_operand.hbm [shape: f32[1,256], index: 4, kind: input, shape index: {}]   ;;  %s1726_s5 = inlined_call_operand.hbm [shape: f32[256,1024], index: 5, kind: input, shape index: {}]   ;;  %s1727_s6 = inlined_call_operand.vmem [shape: f32[1,1024], index: 6, kind: input, shape index: {}]   ;;  %s1728_s7 = inlined_call_operand.hbm [shape: f32[8,1024], index: 7, kind: output, shape index: {}]  }
   0x1   :  { %13 = vsyncpa [#allocation6], 0 }
   0x2   :  { %14 = vsyncpa [#allocation9], 0 }
   0x3   :  { %15 = vsyncpa [#allocation4], 0  ;;  %s1615_s24 = smov [#allocation5]  }
   0x4   :  { %s31_s25 = sshll.u32 %s1615_s24, 4  ;;  %s32_s25 = int_to_ptr.vmem [resolvable:$true] %s31_s25 }
   0x5   :  { %s1495_s26 = scalar_lea.vmem %s32_s25, 32768  ;;  %p1500_p1 = scmp.lt.s32.totalorder %s32_s25, %s32_s25 }
   0x6   :  { %p1496_p0 = scmp.ne.s32.totalorder %s32_s25, %s1495_s26  ;;  %p1501_p2 = scmp.lt.s32.totalorder %s1495_s26, %s1495_s26 }
   0x8   :  { %p1502_p3 = por %p1501_p2, %p1500_p1 }
   0xa   :  { %p1503_p4 = pnand %p1502_p3, %p1496_p0 }
   0xc   :  { %1506 = shalt.err (!%p1503_p4)
}
   0xd   :  { %s1616_s27 = smov 256   ;;  %s1617_s28 = smov 16  }
   0xe   :  { %37 = dma.hbm_to_vmem [thread:$0]  %s1722_s1, 32768, %s32_s25, [#allocation6], %s1616_s27, %s1616_s27, %s1617_s28  }
   0xf   :  { %s1618_s8 = smov [#allocation8]   ;;  %s1619_s10 = smov [#allocation2]  }
  0x10   :  { %s58_s9 = sshll.u32 %s1618_s8, 4  ;;  %s22_s11 = sshll.u32 %s1619_s10, 4  ;;  %s59_s9 = int_to_ptr.vmem [resolvable:$true] %s58_s9  ;;  %s23_s11 = int_to_ptr.vmem [resolvable:$true] %s22_s11 }
  0x11   :  { %s1515_s12 = scalar_lea.vmem %s59_s9, 32  ;;  %p1520_p6 = scmp.lt.s32.totalorder %s59_s9, %s59_s9 }
  0x12   :  { %p1516_p5 = scmp.ne.s32.totalorder %s59_s9, %s1515_s12  ;;  %p1521_p7 = scmp.lt.s32.totalorder %s1515_s12, %s1515_s12 }
  0x14   :  { %p1522_p8 = por %p1521_p7, %p1520_p6 }
  0x16   :  { %p1523_p9 = pnand %p1522_p8, %p1516_p5 }
  0x18   :  { %1526 = shalt.err (!%p1523_p9)
}
  0x19   :  { %61 = dma.hbm_to_vmem [thread:$0]  %s1725_s4, 32, %s59_s9, [#allocation9]  }
  0x1a   :  { %s1535_s15 = scalar_lea.vmem %s23_s11, 1024  ;;  %p1540_p11 = scmp.lt.s32.totalorder %s23_s11, %s23_s11 }
  0x1b   :  { %p1536_p10 = scmp.ne.s32.totalorder %s23_s11, %s1535_s15  ;;  %p1541_p12 = scmp.lt.s32.totalorder %s1535_s15, %s1535_s15 }
  0x1d   :  { %p1542_p13 = por %p1541_p12, %p1540_p11 }
  0x1f   :  { %p1543_p0 = pnand %p1542_p13, %p1536_p10 }
  0x21   :  { %1546 = shalt.err (!%p1543_p0)
}
  0x22   :  { %25 = dma.hbm_to_vmem [thread:$0]  %s1721_s0, 1024, %s23_s11, [#allocation3]  }
  0x23   :  { %s1620_s17 = smov [#allocation7]   ;;  %s1621_s19 = smov [#allocation10]  }
  0x24   :  { %s45_s18 = sshll.u32 %s1620_s17, 4  ;;  %s67_s20 = sshll.u32 %s1621_s19, 4  ;;  %s46_s18 = int_to_ptr.vmem [resolvable:$true] %s45_s18  ;;  %s68_s20 = int_to_ptr.vmem [resolvable:$true] %s67_s20 }
  0x25   :  { %s1555_s21 = scalar_lea.vmem %s46_s18, 8192  ;;  %p1560_p2 = scmp.lt.s32.totalorder %s46_s18, %s46_s18 }
  0x26   :  { %p1556_p1 = scmp.ne.s32.totalorder %s46_s18, %s1555_s21  ;;  %p1561_p3 = scmp.lt.s32.totalorder %s1555_s21, %s1555_s21 }
  0x28   :  { %p1562_p4 = por %p1561_p3, %p1560_p2 }
  0x2a   :  { %p1563_p5 = pnand %p1562_p4, %p1556_p1 }
  0x2c   :  { %1566 = shalt.err (!%p1563_p5)
}
  0x2d   :  { %51 = dma.hbm_to_vmem [thread:$0]  %s1724_s3, 8192, %s46_s18, [#allocation6], %s1616_s27, %s1616_s27, %s1617_s28  }
  0x2e   :  { %s1575_s0 = scalar_lea.vmem %s68_s20, 32768  ;;  %p1580_p7 = scmp.lt.s32.totalorder %s68_s20, %s68_s20 }
  0x2f   :  { %p1576_p6 = scmp.ne.s32.totalorder %s68_s20, %s1575_s0  ;;  %p1581_p8 = scmp.lt.s32.totalorder %s1575_s0, %s1575_s0 }
  0x31   :  { %p1582_p9 = por %p1581_p8, %p1580_p7 }
  0x33   :  { %p1583_p10 = pnand %p1582_p9, %p1576_p6 }
  0x35   :  { %1586 = shalt.err (!%p1583_p10)
}
  0x36   :  { %s1622_s23 = smov 1024   ;;  %s1623_s24 = smov 64  }
  0x37   :  { %73 = dma.hbm_to_vmem [thread:$0]  %s1726_s5, 32768, %s68_s20, [#allocation9], %s1622_s23, %s1622_s23, %s1623_s24  }
  0x38   :  { %1607 = dma.done.wait [#allocation3], 1024  }
  0x39   :  { %1608 = vsyncadd [#allocation3], 4294966272 }
  0x3a   :  { %1609 = dma.done.wait [#allocation6], 40960  }
  0x3b   :  { %1610 = vsyncadd [#allocation6], 4294926336 }
  0x3c   :  { %1611 = dma.done.wait [#allocation9], 32800  }
  0x3d   :  { %1612 = vsyncadd [#allocation9], 4294934496  ;;  %v130_v0 = vld [vmem:[#allocation5 + $0xf8] sm:$0xff]  ;;  %v129_v2 = vld [vmem:[#allocation5 + $0xf0] sm:$0xff] }
  0x3e   :  { %v194_v1 = vld [vmem:[#allocation5 + $0x2f8] sm:$0xff]  ;;  %367 = vmatprep.subr.mxu0 %v130_v0  ;;  %v193_v3 = vld [vmem:[#allocation5 + $0x2f0] sm:$0xff]  ;;  %v128_v4 = vld [vmem:[#allocation5 + $0xe8] sm:$0xff] }
  0x3f   :  { %438 = vmatprep.subr.mxu1 %v194_v1  ;;  %v192_v5 = vld [vmem:[#allocation5 + $0x2e8] sm:$0xff]  ;;  %368 = vmatpush1.msra.mxu0 %v129_v2  ;;  %v127_v6 = vld [vmem:[#allocation5 + $0xe0] sm:$0xff]  ;;  %v126_v8 = vld [vmem:[#allocation5 + $0xd8] sm:$0xff] }
  0x40   :  { %439 = vmatpush1.msra.mxu1 %v193_v3  ;;  %v191_v7 = vld [vmem:[#allocation5 + $0x2e0] sm:$0xff]  ;;  %369 = vmatprep.subr.mxu0 %v128_v4  ;;  %v190_v9 = vld [vmem:[#allocation5 + $0x2d8] sm:$0xff]  ;;  %v125_v10 = vld [vmem:[#allocation5 + $0xd0] sm:$0xff] }
  0x41   :  { %440 = vmatprep.subr.mxu1 %v192_v5  ;;  %v189_v11 = vld [vmem:[#allocation5 + $0x2d0] sm:$0xff]  ;;  %370 = vmatpush1.msra.mxu0 %v127_v6  ;;  %v124_v12 = vld [vmem:[#allocation5 + $0xc8] sm:$0xff]  ;;  %v123_v14 = vld [vmem:[#allocation5 + $0xc0] sm:$0xff] }
  0x42   :  { %441 = vmatpush1.msra.mxu1 %v191_v7  ;;  %v188_v13 = vld [vmem:[#allocation5 + $0x2c8] sm:$0xff]  ;;  %371 = vmatprep.subr.mxu0 %v126_v8  ;;  %v187_v15 = vld [vmem:[#allocation5 + $0x2c0] sm:$0xff]  ;;  %v122_v16 = vld [vmem:[#allocation5 + $0xb8] sm:$0xff] }
  0x43   :  { %442 = vmatprep.subr.mxu1 %v190_v9  ;;  %372 = vmatpush1.msra.mxu0 %v125_v10  ;;  %v186_v17 = vld [vmem:[#allocation5 + $0x2b8] sm:$0xff]  ;;  %v121_v18 = vld [vmem:[#allocation5 + $0xb0] sm:$0xff]  ;;  %v120_v20 = vld [vmem:[#allocation5 + $0xa8] sm:$0xff] }
  0x44   :  { %443 = vmatpush1.msra.mxu1 %v189_v11  ;;  %373 = vmatprep.subr.mxu0 %v124_v12  ;;  %v185_v19 = vld [vmem:[#allocation5 + $0x2b0] sm:$0xff]  ;;  %v184_v21 = vld [vmem:[#allocation5 + $0x2a8] sm:$0xff]  ;;  %v119_v22 = vld [vmem:[#allocation5 + $0xa0] sm:$0xff] }
  0x45   :  { %444 = vmatprep.subr.mxu1 %v188_v13  ;;  %374 = vmatpush1.msra.mxu0 %v123_v14  ;;  %v183_v23 = vld [vmem:[#allocation5 + $0x2a0] sm:$0xff]  ;;  %v118_v24 = vld [vmem:[#allocation5 + $0x98] sm:$0xff]  ;;  %v117_v26 = vld [vmem:[#allocation5 + $0x90] sm:$0xff] }
  0x46   :  { %445 = vmatpush1.msra.mxu1 %v187_v15  ;;  %375 = vmatprep.subr.mxu0 %v122_v16  ;;  %v182_v25 = vld [vmem:[#allocation5 + $0x298] sm:$0xff]  ;;  %v181_v27 = vld [vmem:[#allocation5 + $0x290] sm:$0xff]  ;;  %v116_v28 = vld [vmem:[#allocation5 + $0x88] sm:$0xff] }
  0x47   :  { %446 = vmatprep.subr.mxu1 %v186_v17  ;;  %376 = vmatpush1.msra.mxu0 %v121_v18  ;;  %v180_v29 = vld [vmem:[#allocation5 + $0x288] sm:$0xff]  ;;  %v115_v30 = vld [vmem:[#allocation5 + $0x80] sm:$0xff]  ;;  %v114_v32 = vld [vmem:[#allocation5 + $0x78] sm:$0xff] }
  0x48   :  { %447 = vmatpush1.msra.mxu1 %v185_v19  ;;  %377 = vmatprep.subr.mxu0 %v120_v20  ;;  %v179_v31 = vld [vmem:[#allocation5 + $0x280] sm:$0xff]  ;;  %v178_v33 = vld [vmem:[#allocation5 + $0x278] sm:$0xff]  ;;  %v113_v34 = vld [vmem:[#allocation5 + $0x70] sm:$0xff] }
  0x49   :  { %448 = vmatprep.subr.mxu1 %v184_v21  ;;  %378 = vmatpush1.msra.mxu0 %v119_v22  ;;  %v177_v35 = vld [vmem:[#allocation5 + $0x270] sm:$0xff]  ;;  %v112_v36 = vld [vmem:[#allocation5 + $0x68] sm:$0xff]  ;;  %v111_v38 = vld [vmem:[#allocation5 + $0x60] sm:$0xff] }
  0x4a   :  { %449 = vmatpush1.msra.mxu1 %v183_v23  ;;  %379 = vmatprep.subr.mxu0 %v118_v24  ;;  %v176_v37 = vld [vmem:[#allocation5 + $0x268] sm:$0xff]  ;;  %v175_v39 = vld [vmem:[#allocation5 + $0x260] sm:$0xff]  ;;  %v110_v40 = vld [vmem:[#allocation5 + $0x58] sm:$0xff] }
  0x4b   :  { %450 = vmatprep.subr.mxu1 %v182_v25  ;;  %380 = vmatpush1.msra.mxu0 %v117_v26  ;;  %v174_v41 = vld [vmem:[#allocation5 + $0x258] sm:$0xff]  ;;  %v109_v42 = vld [vmem:[#allocation5 + $0x50] sm:$0xff]  ;;  %v108_v44 = vld [vmem:[#allocation5 + $0x48] sm:$0xff] }
  0x4c   :  { %451 = vmatpush1.msra.mxu1 %v181_v27  ;;  %381 = vmatprep.subr.mxu0 %v116_v28  ;;  %v173_v43 = vld [vmem:[#allocation5 + $0x250] sm:$0xff]  ;;  %v172_v45 = vld [vmem:[#allocation5 + $0x248] sm:$0xff]  ;;  %v107_v46 = vld [vmem:[#allocation5 + $0x40] sm:$0xff] }
  0x4d   :  { %452 = vmatprep.subr.mxu1 %v180_v29  ;;  %382 = vmatpush1.msra.mxu0 %v115_v30  ;;  %v171_v47 = vld [vmem:[#allocation5 + $0x240] sm:$0xff]  ;;  %v106_v48 = vld [vmem:[#allocation5 + $0x38] sm:$0xff]  ;;  %v105_v50 = vld [vmem:[#allocation5 + $0x30] sm:$0xff] }
  0x4e   :  { %453 = vmatpush1.msra.mxu1 %v179_v31  ;;  %383 = vmatprep.subr.mxu0 %v114_v32  ;;  %v170_v49 = vld [vmem:[#allocation5 + $0x238] sm:$0xff]  ;;  %v169_v51 = vld [vmem:[#allocation5 + $0x230] sm:$0xff]  ;;  %v104_v52 = vld [vmem:[#allocation5 + $0x28] sm:$0xff] }
  0x4f   :  { %454 = vmatprep.subr.mxu1 %v178_v33  ;;  %384 = vmatpush1.msra.mxu0 %v113_v34  ;;  %v168_v53 = vld [vmem:[#allocation5 + $0x228] sm:$0xff]  ;;  %v103_v54 = vld [vmem:[#allocation5 + $0x20] sm:$0xff]  ;;  %v102_v56 = vld [vmem:[#allocation5 + $0x18] sm:$0xff] }
  0x50   :  { %455 = vmatpush1.msra.mxu1 %v177_v35  ;;  %385 = vmatprep.subr.mxu0 %v112_v36  ;;  %v167_v55 = vld [vmem:[#allocation5 + $0x220] sm:$0xff]  ;;  %v166_v57 = vld [vmem:[#allocation5 + $0x218] sm:$0xff]  ;;  %v101_v58 = vld [vmem:[#allocation5 + $0x10] sm:$0xff] }
  0x51   :  { %456 = vmatprep.subr.mxu1 %v176_v37  ;;  %386 = vmatpush1.msra.mxu0 %v111_v38  ;;  %v165_v59 = vld [vmem:[#allocation5 + $0x210] sm:$0xff]  ;;  %v100_v60 = vld [vmem:[#allocation5 + $0x8] sm:$0xff]  ;;  %v99_v62 = vld [vmem:[#allocation5] sm:$0xff] }
  0x52   :  { %457 = vmatpush1.msra.mxu1 %v175_v39  ;;  %387 = vmatprep.subr.mxu0 %v110_v40  ;;  %v164_v61 = vld [vmem:[#allocation5 + $0x208] sm:$0xff]  ;;  %v163_v63 = vld [vmem:[#allocation5 + $0x200] sm:$0xff]  ;;  %v162_v0 = vld [vmem:[#allocation5 + $0x1f8] sm:$0xff] }
  0x53   :  { %458 = vmatprep.subr.mxu1 %v174_v41  ;;  %388 = vmatpush1.msra.mxu0 %v109_v42  ;;  %v226_v1 = vld [vmem:[#allocation5 + $0x3f8] sm:$0xff]  ;;  %v161_v2 = vld [vmem:[#allocation5 + $0x1f0] sm:$0xff]  ;;  %v160_v4 = vld [vmem:[#allocation5 + $0x1e8] sm:$0xff] }
  0x54   :  { %459 = vmatpush1.msra.mxu1 %v173_v43  ;;  %389 = vmatprep.subr.mxu0 %v108_v44  ;;  %v225_v3 = vld [vmem:[#allocation5 + $0x3f0] sm:$0xff]  ;;  %v224_v5 = vld [vmem:[#allocation5 + $0x3e8] sm:$0xff]  ;;  %v159_v6 = vld [vmem:[#allocation5 + $0x1e0] sm:$0xff] }
  0x55   :  { %460 = vmatprep.subr.mxu1 %v172_v45  ;;  %390 = vmatpush1.msra.mxu0 %v107_v46  ;;  %v223_v7 = vld [vmem:[#allocation5 + $0x3e0] sm:$0xff]  ;;  %v158_v8 = vld [vmem:[#allocation5 + $0x1d8] sm:$0xff]  ;;  %v157_v10 = vld [vmem:[#allocation5 + $0x1d0] sm:$0xff] }
  0x56   :  { %461 = vmatpush1.msra.mxu1 %v171_v47  ;;  %391 = vmatprep.subr.mxu0 %v106_v48  ;;  %v222_v9 = vld [vmem:[#allocation5 + $0x3d8] sm:$0xff]  ;;  %v221_v11 = vld [vmem:[#allocation5 + $0x3d0] sm:$0xff]  ;;  %v156_v12 = vld [vmem:[#allocation5 + $0x1c8] sm:$0xff] }
  0x57   :  { %462 = vmatprep.subr.mxu1 %v170_v49  ;;  %392 = vmatpush1.msra.mxu0 %v105_v50  ;;  %v220_v13 = vld [vmem:[#allocation5 + $0x3c8] sm:$0xff]  ;;  %v155_v14 = vld [vmem:[#allocation5 + $0x1c0] sm:$0xff]  ;;  %v154_v16 = vld [vmem:[#allocation5 + $0x1b8] sm:$0xff] }
  0x58   :  { %463 = vmatpush1.msra.mxu1 %v169_v51  ;;  %393 = vmatprep.subr.mxu0 %v104_v52  ;;  %v219_v15 = vld [vmem:[#allocation5 + $0x3c0] sm:$0xff]  ;;  %v218_v17 = vld [vmem:[#allocation5 + $0x3b8] sm:$0xff]  ;;  %v153_v18 = vld [vmem:[#allocation5 + $0x1b0] sm:$0xff] }
  0x59   :  { %464 = vmatprep.subr.mxu1 %v168_v53  ;;  %394 = vmatpush1.msra.mxu0 %v103_v54  ;;  %v217_v19 = vld [vmem:[#allocation5 + $0x3b0] sm:$0xff]  ;;  %v152_v20 = vld [vmem:[#allocation5 + $0x1a8] sm:$0xff]  ;;  %v151_v22 = vld [vmem:[#allocation5 + $0x1a0] sm:$0xff] }
  0x5a   :  { %465 = vmatpush1.msra.mxu1 %v167_v55  ;;  %395 = vmatprep.subr.mxu0 %v102_v56  ;;  %v216_v21 = vld [vmem:[#allocation5 + $0x3a8] sm:$0xff]  ;;  %v215_v23 = vld [vmem:[#allocation5 + $0x3a0] sm:$0xff]  ;;  %v150_v24 = vld [vmem:[#allocation5 + $0x198] sm:$0xff] }
  0x5b   :  { %466 = vmatprep.subr.mxu1 %v166_v57  ;;  %396 = vmatpush1.msra.mxu0 %v101_v58  ;;  %v214_v25 = vld [vmem:[#allocation5 + $0x398] sm:$0xff]  ;;  %v149_v26 = vld [vmem:[#allocation5 + $0x190] sm:$0xff]  ;;  %v148_v28 = vld [vmem:[#allocation5 + $0x188] sm:$0xff] }
  0x5c   :  { %467 = vmatpush1.msra.mxu1 %v165_v59  ;;  %397 = vmatprep.subr.mxu0 %v100_v60  ;;  %v213_v27 = vld [vmem:[#allocation5 + $0x390] sm:$0xff]  ;;  %v212_v29 = vld [vmem:[#allocation5 + $0x388] sm:$0xff]  ;;  %v147_v30 = vld [vmem:[#allocation5 + $0x180] sm:$0xff] }
  0x5d   :  { %468 = vmatprep.subr.mxu1 %v164_v61  ;;  %398 = vmatpush1.msra.mxu0 %v99_v62  ;;  %v211_v31 = vld [vmem:[#allocation5 + $0x380] sm:$0xff]  ;;  %v146_v32 = vld [vmem:[#allocation5 + $0x178] sm:$0xff]  ;;  %v145_v34 = vld [vmem:[#allocation5 + $0x170] sm:$0xff] }
  0x5e   :  { %469 = vmatpush1.msra.mxu1 %v163_v63  ;;  %399 = vmatprep.subr.mxu0 %v162_v0  ;;  %v210_v33 = vld [vmem:[#allocation5 + $0x378] sm:$0xff]  ;;  %v209_v35 = vld [vmem:[#allocation5 + $0x370] sm:$0xff]  ;;  %v144_v36 = vld [vmem:[#allocation5 + $0x168] sm:$0xff] }
  0x5f   :  { %470 = vmatprep.subr.mxu1 %v226_v1  ;;  %400 = vmatpush2.msra.mxu0 %v161_v2  ;;  %v208_v37 = vld [vmem:[#allocation5 + $0x368] sm:$0xff]  ;;  %v143_v38 = vld [vmem:[#allocation5 + $0x160] sm:$0xff]  ;;  %v142_v40 = vld [vmem:[#allocation5 + $0x158] sm:$0xff] }
  0x60   :  { %471 = vmatpush2.msra.mxu1 %v225_v3  ;;  %401 = vmatprep.subr.mxu0 %v160_v4  ;;  %v207_v39 = vld [vmem:[#allocation5 + $0x360] sm:$0xff]  ;;  %v206_v41 = vld [vmem:[#allocation5 + $0x358] sm:$0xff]  ;;  %v141_v42 = vld [vmem:[#allocation5 + $0x150] sm:$0xff] }
  0x61   :  { %472 = vmatprep.subr.mxu1 %v224_v5  ;;  %402 = vmatpush2.msra.mxu0 %v159_v6  ;;  %v205_v43 = vld [vmem:[#allocation5 + $0x350] sm:$0xff]  ;;  %v140_v44 = vld [vmem:[#allocation5 + $0x148] sm:$0xff]  ;;  %v139_v46 = vld [vmem:[#allocation5 + $0x140] sm:$0xff] }
  0x62   :  { %473 = vmatpush2.msra.mxu1 %v223_v7  ;;  %403 = vmatprep.subr.mxu0 %v158_v8  ;;  %v204_v45 = vld [vmem:[#allocation5 + $0x348] sm:$0xff]  ;;  %v203_v47 = vld [vmem:[#allocation5 + $0x340] sm:$0xff]  ;;  %v138_v48 = vld [vmem:[#allocation5 + $0x138] sm:$0xff] }
  0x63   :  { %474 = vmatprep.subr.mxu1 %v222_v9  ;;  %404 = vmatpush2.msra.mxu0 %v157_v10  ;;  %v202_v49 = vld [vmem:[#allocation5 + $0x338] sm:$0xff]  ;;  %v137_v50 = vld [vmem:[#allocation5 + $0x130] sm:$0xff]  ;;  %v136_v52 = vld [vmem:[#allocation5 + $0x128] sm:$0xff] }
  0x64   :  { %475 = vmatpush2.msra.mxu1 %v221_v11  ;;  %405 = vmatprep.subr.mxu0 %v156_v12  ;;  %v201_v51 = vld [vmem:[#allocation5 + $0x330] sm:$0xff]  ;;  %v200_v53 = vld [vmem:[#allocation5 + $0x328] sm:$0xff]  ;;  %v135_v54 = vld [vmem:[#allocation5 + $0x120] sm:$0xff] }
  0x65   :  { %476 = vmatprep.subr.mxu1 %v220_v13  ;;  %406 = vmatpush2.msra.mxu0 %v155_v14  ;;  %v199_v55 = vld [vmem:[#allocation5 + $0x320] sm:$0xff]  ;;  %v134_v56 = vld [vmem:[#allocation5 + $0x118] sm:$0xff]  ;;  %v133_v58 = vld [vmem:[#allocation5 + $0x110] sm:$0xff] }
  0x66   :  { %477 = vmatpush2.msra.mxu1 %v219_v15  ;;  %407 = vmatprep.subr.mxu0 %v154_v16  ;;  %v198_v57 = vld [vmem:[#allocation5 + $0x318] sm:$0xff]  ;;  %v197_v59 = vld [vmem:[#allocation5 + $0x310] sm:$0xff]  ;;  %v132_v60 = vld [vmem:[#allocation5 + $0x108] sm:$0xff] }
  0x67   :  { %478 = vmatprep.subr.mxu1 %v218_v17  ;;  %408 = vmatpush2.msra.mxu0 %v153_v18  ;;  %v196_v61 = vld [vmem:[#allocation5 + $0x308] sm:$0xff]  ;;  %v131_v62 = vld [vmem:[#allocation5 + $0x100] sm:$0xff]  ;;  %v94_v2 = vld [vmem:[#allocation2 + $0x18] sm:$0xff] }
  0x68   :  { %479 = vmatpush2.msra.mxu1 %v217_v19  ;;  %409 = vmatprep.subr.mxu0 %v152_v20  ;;  %v92_v63 = vld [vmem:[#allocation2 + $0x8] sm:$0xff]  ;;  %v195_v0 = vld [vmem:[#allocation5 + $0x300] sm:$0xff]  ;;  %v258_v3 = vld [vmem:[#allocation5 + $0x4f8] sm:$0xff] }
  0x69   :  { %480 = vmatprep.subr.mxu1 %v216_v21  ;;  %410 = vmatpush2.msra.mxu0 %v151_v22  ;;  %v91_v1 = vld [vmem:[#allocation2] sm:$0xff]  ;;  %v322_v4 = vld [vmem:[#allocation5 + $0x6f8] sm:$0xff]  ;;  %v93_v5 = vld [vmem:[#allocation2 + $0x10] sm:$0xff] }
  0x6a   :  { %481 = vmatpush2.msra.mxu1 %v215_v23  ;;  %411 = vmatprep.subr.mxu0 %v150_v24  ;;  %v257_v6 = vld [vmem:[#allocation5 + $0x4f0] sm:$0xff]  ;;  %v256_v8 = vld [vmem:[#allocation5 + $0x4e8] sm:$0xff]  ;;  %v255_v10 = vld [vmem:[#allocation5 + $0x4e0] sm:$0xff] }
  0x6b   :  { %482 = vmatprep.subr.mxu1 %v214_v25  ;;  %412 = vmatpush2.msra.mxu0 %v149_v26  ;;  %v321_v7 = vld [vmem:[#allocation5 + $0x6f0] sm:$0xff]  ;;  %v320_v9 = vld [vmem:[#allocation5 + $0x6e8] sm:$0xff]  ;;  %v319_v11 = vld [vmem:[#allocation5 + $0x6e0] sm:$0xff] }
  0x6c   :  { %483 = vmatpush2.msra.mxu1 %v213_v27  ;;  %413 = vmatprep.subr.mxu0 %v148_v28  ;;  %v254_v12 = vld [vmem:[#allocation5 + $0x4d8] sm:$0xff]  ;;  %v253_v14 = vld [vmem:[#allocation5 + $0x4d0] sm:$0xff]  ;;  %v252_v16 = vld [vmem:[#allocation5 + $0x4c8] sm:$0xff] }
  0x6d   :  { %484 = vmatprep.subr.mxu1 %v212_v29  ;;  %414 = vmatpush2.msra.mxu0 %v147_v30  ;;  %v318_v13 = vld [vmem:[#allocation5 + $0x6d8] sm:$0xff]  ;;  %v317_v15 = vld [vmem:[#allocation5 + $0x6d0] sm:$0xff]  ;;  %v316_v17 = vld [vmem:[#allocation5 + $0x6c8] sm:$0xff] }
  0x6e   :  { %485 = vmatpush2.msra.mxu1 %v211_v31  ;;  %415 = vmatprep.subr.mxu0 %v146_v32  ;;  %v251_v18 = vld [vmem:[#allocation5 + $0x4c0] sm:$0xff]  ;;  %v250_v20 = vld [vmem:[#allocation5 + $0x4b8] sm:$0xff]  ;;  %v249_v22 = vld [vmem:[#allocation5 + $0x4b0] sm:$0xff] }
  0x6f   :  { %486 = vmatprep.subr.mxu1 %v210_v33  ;;  %416 = vmatpush2.msra.mxu0 %v145_v34  ;;  %v315_v19 = vld [vmem:[#allocation5 + $0x6c0] sm:$0xff]  ;;  %v314_v21 = vld [vmem:[#allocation5 + $0x6b8] sm:$0xff]  ;;  %v313_v23 = vld [vmem:[#allocation5 + $0x6b0] sm:$0xff] }
  0x70   :  { %487 = vmatpush2.msra.mxu1 %v209_v35  ;;  %417 = vmatprep.subr.mxu0 %v144_v36  ;;  %v248_v24 = vld [vmem:[#allocation5 + $0x4a8] sm:$0xff]  ;;  %v247_v26 = vld [vmem:[#allocation5 + $0x4a0] sm:$0xff]  ;;  %v246_v28 = vld [vmem:[#allocation5 + $0x498] sm:$0xff] }
  0x71   :  { %488 = vmatprep.subr.mxu1 %v208_v37  ;;  %418 = vmatpush2.msra.mxu0 %v143_v38  ;;  %v312_v25 = vld [vmem:[#allocation5 + $0x6a8] sm:$0xff]  ;;  %v311_v27 = vld [vmem:[#allocation5 + $0x6a0] sm:$0xff]  ;;  %v310_v29 = vld [vmem:[#allocation5 + $0x698] sm:$0xff] }
  0x72   :  { %489 = vmatpush2.msra.mxu1 %v207_v39  ;;  %419 = vmatprep.subr.mxu0 %v142_v40  ;;  %v245_v30 = vld [vmem:[#allocation5 + $0x490] sm:$0xff]  ;;  %v244_v32 = vld [vmem:[#allocation5 + $0x488] sm:$0xff]  ;;  %v243_v34 = vld [vmem:[#allocation5 + $0x480] sm:$0xff] }
  0x73   :  { %490 = vmatprep.subr.mxu1 %v206_v41  ;;  %420 = vmatpush2.msra.mxu0 %v141_v42  ;;  %v309_v31 = vld [vmem:[#allocation5 + $0x690] sm:$0xff]  ;;  %v308_v33 = vld [vmem:[#allocation5 + $0x688] sm:$0xff]  ;;  %v307_v35 = vld [vmem:[#allocation5 + $0x680] sm:$0xff] }
  0x74   :  { %491 = vmatpush2.msra.mxu1 %v205_v43  ;;  %421 = vmatprep.subr.mxu0 %v140_v44  ;;  %v242_v36 = vld [vmem:[#allocation5 + $0x478] sm:$0xff]  ;;  %v241_v38 = vld [vmem:[#allocation5 + $0x470] sm:$0xff]  ;;  %v240_v40 = vld [vmem:[#allocation5 + $0x468] sm:$0xff] }
  0x75   :  { %492 = vmatprep.subr.mxu1 %v204_v45  ;;  %422 = vmatpush2.msra.mxu0 %v139_v46  ;;  %v306_v37 = vld [vmem:[#allocation5 + $0x678] sm:$0xff]  ;;  %v305_v39 = vld [vmem:[#allocation5 + $0x670] sm:$0xff]  ;;  %v304_v41 = vld [vmem:[#allocation5 + $0x668] sm:$0xff] }
  0x76   :  { %493 = vmatpush2.msra.mxu1 %v203_v47  ;;  %423 = vmatprep.subr.mxu0 %v138_v48  ;;  %v239_v42 = vld [vmem:[#allocation5 + $0x460] sm:$0xff]  ;;  %v238_v44 = vld [vmem:[#allocation5 + $0x458] sm:$0xff]  ;;  %v237_v46 = vld [vmem:[#allocation5 + $0x450] sm:$0xff] }
  0x77   :  { %494 = vmatprep.subr.mxu1 %v202_v49  ;;  %424 = vmatpush2.msra.mxu0 %v137_v50  ;;  %v303_v43 = vld [vmem:[#allocation5 + $0x660] sm:$0xff]  ;;  %v302_v45 = vld [vmem:[#allocation5 + $0x658] sm:$0xff]  ;;  %v301_v47 = vld [vmem:[#allocation5 + $0x650] sm:$0xff] }
  0x78   :  { %495 = vmatpush2.msra.mxu1 %v201_v51  ;;  %425 = vmatprep.subr.mxu0 %v136_v52  ;;  %v236_v48 = vld [vmem:[#allocation5 + $0x448] sm:$0xff]  ;;  %v235_v50 = vld [vmem:[#allocation5 + $0x440] sm:$0xff]  ;;  %v234_v52 = vld [vmem:[#allocation5 + $0x438] sm:$0xff] }
  0x79   :  { %496 = vmatprep.subr.mxu1 %v200_v53  ;;  %426 = vmatpush2.msra.mxu0 %v135_v54  ;;  %v300_v49 = vld [vmem:[#allocation5 + $0x648] sm:$0xff]  ;;  %v299_v51 = vld [vmem:[#allocation5 + $0x640] sm:$0xff]  ;;  %v298_v53 = vld [vmem:[#allocation5 + $0x638] sm:$0xff] }
  0x7a   :  { %497 = vmatpush2.msra.mxu1 %v199_v55  ;;  %427 = vmatprep.subr.mxu0 %v134_v56  ;;  %v233_v54 = vld [vmem:[#allocation5 + $0x430] sm:$0xff]  ;;  %v232_v56 = vld [vmem:[#allocation5 + $0x428] sm:$0xff] }
  0x7b   :  { %498 = vmatprep.subr.mxu1 %v198_v57  ;;  %428 = vmatpush2.msra.mxu0 %v133_v58  ;;  %v297_v55 = vld [vmem:[#allocation5 + $0x630] sm:$0xff]  ;;  %v296_v57 = vld [vmem:[#allocation5 + $0x628] sm:$0xff]  ;;  %v231_v58 = vld [vmem:[#allocation5 + $0x420] sm:$0xff] }
  0x7c   :  { %499 = vmatpush2.msra.mxu1 %v197_v59  ;;  %429 = vmatprep.subr.mxu0 %v132_v60  ;;  %v295_v59 = vld [vmem:[#allocation5 + $0x620] sm:$0xff]  ;;  %v230_v60 = vld [vmem:[#allocation5 + $0x418] sm:$0xff] }
  0x7d   :  { %500 = vmatprep.subr.mxu1 %v196_v61  ;;  %430 = vmatpush2.msra.mxu0 %v131_v62  ;;  %v294_v61 = vld [vmem:[#allocation5 + $0x618] sm:$0xff]  ;;  %v229_v62 = vld [vmem:[#allocation5 + $0x410] sm:$0xff] }
  0x7e   :  { %431 = vmatprep.mubr.f32.mxu0 %v92_v63  ;;  %501 = vmatpush2.msra.mxu1 %v195_v0  ;;  %v293_v63 = vld [vmem:[#allocation5 + $0x610] sm:$0xff]  ;;  %v228_v0 = vld [vmem:[#allocation5 + $0x408] sm:$0xff] }
  0x7f   :  { %432 = vmatmul.mubr.f32.vlgmr.msra.gmra.mxu0 %v91_v1  ;;  %502 = vmatprep.mubr.f32.mxu1 %v94_v2  ;;  %v292_v1 = vld [vmem:[#allocation5 + $0x608] sm:$0xff]  ;;  %v227_v2 = vld [vmem:[#allocation5 + $0x400] sm:$0xff] }
  0x80   :  { %509 = vmatprep.subr.mxu0 %v258_v3  ;;  %580 = vmatprep.subr.mxu1 %v322_v4  ;;  %v291_v3 = vld [vmem:[#allocation5 + $0x600] sm:$0xff]  ;;  %v290_v4 = vld [vmem:[#allocation5 + $0x5f8] sm:$0xff] }
  0x81   :  { %503 = vmatmul.mubr.f32.vlgmr.msra.gmra.mxu1 %v93_v5  ;;  %510 = vmatpush1.msra.mxu0 %v257_v6  ;;  %v354_v5 = vld [vmem:[#allocation5 + $0x7f8] sm:$0xff]  ;;  %v289_v6 = vld [vmem:[#allocation5 + $0x5f0] sm:$0xff] }
  0x82   :  { %581 = vmatpush1.msra.mxu1 %v321_v7  ;;  %511 = vmatprep.subr.mxu0 %v256_v8  ;;  %v353_v7 = vld [vmem:[#allocation5 + $0x7f0] sm:$0xff]  ;;  %v288_v8 = vld [vmem:[#allocation5 + $0x5e8] sm:$0xff] }
  0x83   :  { %582 = vmatprep.subr.mxu1 %v320_v9  ;;  %512 = vmatpush1.msra.mxu0 %v255_v10  ;;  %v352_v9 = vld [vmem:[#allocation5 + $0x7e8] sm:$0xff]  ;;  %v287_v10 = vld [vmem:[#allocation5 + $0x5e0] sm:$0xff] }
  0x84   :  { %583 = vmatpush1.msra.mxu1 %v319_v11  ;;  %513 = vmatprep.subr.mxu0 %v254_v12  ;;  %v351_v11 = vld [vmem:[#allocation5 + $0x7e0] sm:$0xff]  ;;  %v286_v12 = vld [vmem:[#allocation5 + $0x5d8] sm:$0xff] }
  0x85   :  { %584 = vmatprep.subr.mxu1 %v318_v13  ;;  %514 = vmatpush1.msra.mxu0 %v253_v14  ;;  %v350_v13 = vld [vmem:[#allocation5 + $0x7d8] sm:$0xff]  ;;  %v285_v14 = vld [vmem:[#allocation5 + $0x5d0] sm:$0xff] }
  0x86   :  { %585 = vmatpush1.msra.mxu1 %v317_v15  ;;  %515 = vmatprep.subr.mxu0 %v252_v16  ;;  %v349_v15 = vld [vmem:[#allocation5 + $0x7d0] sm:$0xff]  ;;  %v284_v16 = vld [vmem:[#allocation5 + $0x5c8] sm:$0xff] }
  0x87   :  { %586 = vmatprep.subr.mxu1 %v316_v17  ;;  %516 = vmatpush1.msra.mxu0 %v251_v18  ;;  %v348_v17 = vld [vmem:[#allocation5 + $0x7c8] sm:$0xff]  ;;  %v283_v18 = vld [vmem:[#allocation5 + $0x5c0] sm:$0xff] }
  0x88   :  { %587 = vmatpush1.msra.mxu1 %v315_v19  ;;  %517 = vmatprep.subr.mxu0 %v250_v20  ;;  %v347_v19 = vld [vmem:[#allocation5 + $0x7c0] sm:$0xff]  ;;  %v282_v20 = vld [vmem:[#allocation5 + $0x5b8] sm:$0xff] }
  0x89   :  { %588 = vmatprep.subr.mxu1 %v314_v21  ;;  %518 = vmatpush1.msra.mxu0 %v249_v22  ;;  %v346_v21 = vld [vmem:[#allocation5 + $0x7b8] sm:$0xff]  ;;  %v281_v22 = vld [vmem:[#allocation5 + $0x5b0] sm:$0xff] }
  0x8a   :  { %589 = vmatpush1.msra.mxu1 %v313_v23  ;;  %519 = vmatprep.subr.mxu0 %v248_v24  ;;  %v345_v23 = vld [vmem:[#allocation5 + $0x7b0] sm:$0xff]  ;;  %v280_v24 = vld [vmem:[#allocation5 + $0x5a8] sm:$0xff] }
  0x8b   :  { %590 = vmatprep.subr.mxu1 %v312_v25  ;;  %520 = vmatpush1.msra.mxu0 %v247_v26  ;;  %v344_v25 = vld [vmem:[#allocation5 + $0x7a8] sm:$0xff]  ;;  %v279_v26 = vld [vmem:[#allocation5 + $0x5a0] sm:$0xff] }
  0x8c   :  { %591 = vmatpush1.msra.mxu1 %v311_v27  ;;  %521 = vmatprep.subr.mxu0 %v246_v28  ;;  %v343_v27 = vld [vmem:[#allocation5 + $0x7a0] sm:$0xff]  ;;  %v278_v28 = vld [vmem:[#allocation5 + $0x598] sm:$0xff] }
  0x8d   :  { %592 = vmatprep.subr.mxu1 %v310_v29  ;;  %522 = vmatpush1.msra.mxu0 %v245_v30  ;;  %v342_v29 = vld [vmem:[#allocation5 + $0x798] sm:$0xff]  ;;  %v277_v30 = vld [vmem:[#allocation5 + $0x590] sm:$0xff] }
  0x8e   :  { %593 = vmatpush1.msra.mxu1 %v309_v31  ;;  %523 = vmatprep.subr.mxu0 %v244_v32  ;;  %v341_v31 = vld [vmem:[#allocation5 + $0x790] sm:$0xff]  ;;  %v276_v32 = vld [vmem:[#allocation5 + $0x588] sm:$0xff] }
  0x8f   :  { %594 = vmatprep.subr.mxu1 %v308_v33  ;;  %524 = vmatpush1.msra.mxu0 %v243_v34  ;;  %v340_v33 = vld [vmem:[#allocation5 + $0x788] sm:$0xff]  ;;  %v275_v34 = vld [vmem:[#allocation5 + $0x580] sm:$0xff] }
  0x90   :  { %595 = vmatpush1.msra.mxu1 %v307_v35  ;;  %525 = vmatprep.subr.mxu0 %v242_v36  ;;  %v339_v35 = vld [vmem:[#allocation5 + $0x780] sm:$0xff]  ;;  %v274_v36 = vld [vmem:[#allocation5 + $0x578] sm:$0xff] }
  0x91   :  { %596 = vmatprep.subr.mxu1 %v306_v37  ;;  %526 = vmatpush1.msra.mxu0 %v241_v38  ;;  %v338_v37 = vld [vmem:[#allocation5 + $0x778] sm:$0xff]  ;;  %v273_v38 = vld [vmem:[#allocation5 + $0x570] sm:$0xff] }
  0x92   :  { %597 = vmatpush1.msra.mxu1 %v305_v39  ;;  %527 = vmatprep.subr.mxu0 %v240_v40  ;;  %v337_v39 = vld [vmem:[#allocation5 + $0x770] sm:$0xff]  ;;  %v272_v40 = vld [vmem:[#allocation5 + $0x568] sm:$0xff] }
  0x93   :  { %598 = vmatprep.subr.mxu1 %v304_v41  ;;  %528 = vmatpush1.msra.mxu0 %v239_v42  ;;  %v336_v41 = vld [vmem:[#allocation5 + $0x768] sm:$0xff]  ;;  %v271_v42 = vld [vmem:[#allocation5 + $0x560] sm:$0xff] }
  0x94   :  { %599 = vmatpush1.msra.mxu1 %v303_v43  ;;  %529 = vmatprep.subr.mxu0 %v238_v44  ;;  %v335_v43 = vld [vmem:[#allocation5 + $0x760] sm:$0xff]  ;;  %v270_v44 = vld [vmem:[#allocation5 + $0x558] sm:$0xff] }
  0x95   :  { %600 = vmatprep.subr.mxu1 %v302_v45  ;;  %530 = vmatpush1.msra.mxu0 %v237_v46  ;;  %v334_v45 = vld [vmem:[#allocation5 + $0x758] sm:$0xff]  ;;  %v269_v46 = vld [vmem:[#allocation5 + $0x550] sm:$0xff] }
  0x96   :  { %601 = vmatpush1.msra.mxu1 %v301_v47  ;;  %531 = vmatprep.subr.mxu0 %v236_v48  ;;  %v333_v47 = vld [vmem:[#allocation5 + $0x750] sm:$0xff]  ;;  %v268_v48 = vld [vmem:[#allocation5 + $0x548] sm:$0xff] }
  0x97   :  { %602 = vmatprep.subr.mxu1 %v300_v49  ;;  %532 = vmatpush1.msra.mxu0 %v235_v50  ;;  %v332_v49 = vld [vmem:[#allocation5 + $0x748] sm:$0xff]  ;;  %v267_v50 = vld [vmem:[#allocation5 + $0x540] sm:$0xff] }
  0x98   :  { %603 = vmatpush1.msra.mxu1 %v299_v51  ;;  %533 = vmatprep.subr.mxu0 %v234_v52  ;;  %v331_v51 = vld [vmem:[#allocation5 + $0x740] sm:$0xff]  ;;  %v266_v52 = vld [vmem:[#allocation5 + $0x538] sm:$0xff] }
  0x99   :  { %604 = vmatprep.subr.mxu1 %v298_v53  ;;  %534 = vmatpush1.msra.mxu0 %v233_v54  ;;  %v330_v53 = vld [vmem:[#allocation5 + $0x738] sm:$0xff]  ;;  %v265_v54 = vld [vmem:[#allocation5 + $0x530] sm:$0xff] }
  0x9a   :  { %605 = vmatpush1.msra.mxu1 %v297_v55  ;;  %535 = vmatprep.subr.mxu0 %v232_v56  ;;  %v329_v55 = vld [vmem:[#allocation5 + $0x730] sm:$0xff]  ;;  %v264_v56 = vld [vmem:[#allocation5 + $0x528] sm:$0xff] }
  0x9b   :  { %606 = vmatprep.subr.mxu1 %v296_v57  ;;  %536 = vmatpush1.msra.mxu0 %v231_v58  ;;  %v328_v57 = vld [vmem:[#allocation5 + $0x728] sm:$0xff]  ;;  %v263_v58 = vld [vmem:[#allocation5 + $0x520] sm:$0xff] }
  0x9c   :  { %607 = vmatpush1.msra.mxu1 %v295_v59  ;;  %537 = vmatprep.subr.mxu0 %v230_v60  ;;  %v327_v59 = vld [vmem:[#allocation5 + $0x720] sm:$0xff]  ;;  %v262_v60 = vld [vmem:[#allocation5 + $0x518] sm:$0xff] }
  0x9d   :  { %608 = vmatprep.subr.mxu1 %v294_v61  ;;  %538 = vmatpush1.msra.mxu0 %v229_v62  ;;  %v326_v61 = vld [vmem:[#allocation5 + $0x718] sm:$0xff]  ;;  %v261_v62 = vld [vmem:[#allocation5 + $0x510] sm:$0xff] }
  0x9e   :  { %609 = vmatpush1.msra.mxu1 %v293_v63  ;;  %539 = vmatprep.subr.mxu0 %v228_v0  ;;  %v325_v63 = vld [vmem:[#allocation5 + $0x710] sm:$0xff]  ;;  %v260_v0 = vld [vmem:[#allocation5 + $0x508] sm:$0xff] }
  0x9f   :  { %610 = vmatprep.subr.mxu1 %v292_v1  ;;  %540 = vmatpush1.msra.mxu0 %v227_v2  ;;  %v324_v1 = vld [vmem:[#allocation5 + $0x708] sm:$0xff]  ;;  %v259_v2 = vld [vmem:[#allocation5 + $0x500] sm:$0xff] }
  0xa0   :  { %611 = vmatpush1.msra.mxu1 %v291_v3  ;;  %541 = vmatprep.subr.mxu0 %v290_v4  ;;  %v96_v3 = vld [vmem:[#allocation2 + $0x28] sm:$0xff]  ;;  %v323_v4 = vld [vmem:[#allocation5 + $0x700] sm:$0xff] }
  0xa1   :  { %612 = vmatprep.subr.mxu1 %v354_v5  ;;  %542 = vmatpush2.msra.mxu0 %v289_v6  ;;  %v98_v5 = vld [vmem:[#allocation2 + $0x38] sm:$0xff]  ;;  %v95_v6 = vld [vmem:[#allocation2 + $0x20] sm:$0xff] }
  0xa2   :  { %613 = vmatpush2.msra.mxu1 %v353_v7  ;;  %543 = vmatprep.subr.mxu0 %v288_v8  ;;  %v97_v7 = vld [vmem:[#allocation2 + $0x30] sm:$0xff]  ;;  %v710_v8 = vld [vmem:[#allocation7 + $0xf8] sm:$0xff] }
  0xa3   :  { %614 = vmatprep.subr.mxu1 %v352_v9  ;;  %544 = vmatpush2.msra.mxu0 %v287_v10  ;;  %v709_v9 = vld [vmem:[#allocation7 + $0xf0] sm:$0xff]  ;;  %v708_v10 = vld [vmem:[#allocation7 + $0xe8] sm:$0xff] }
  0xa4   :  { %615 = vmatpush2.msra.mxu1 %v351_v11  ;;  %545 = vmatprep.subr.mxu0 %v286_v12  ;;  %v707_v11 = vld [vmem:[#allocation7 + $0xe0] sm:$0xff]  ;;  %v706_v12 = vld [vmem:[#allocation7 + $0xd8] sm:$0xff] }
  0xa5   :  { %616 = vmatprep.subr.mxu1 %v350_v13  ;;  %546 = vmatpush2.msra.mxu0 %v285_v14  ;;  %v705_v13 = vld [vmem:[#allocation7 + $0xd0] sm:$0xff]  ;;  %v704_v14 = vld [vmem:[#allocation7 + $0xc8] sm:$0xff] }
  0xa6   :  { %617 = vmatpush2.msra.mxu1 %v349_v15  ;;  %547 = vmatprep.subr.mxu0 %v284_v16  ;;  %v703_v15 = vld [vmem:[#allocation7 + $0xc0] sm:$0xff]  ;;  %v702_v16 = vld [vmem:[#allocation7 + $0xb8] sm:$0xff] }
  0xa7   :  { %618 = vmatprep.subr.mxu1 %v348_v17  ;;  %548 = vmatpush2.msra.mxu0 %v283_v18  ;;  %v701_v17 = vld [vmem:[#allocation7 + $0xb0] sm:$0xff]  ;;  %v700_v18 = vld [vmem:[#allocation7 + $0xa8] sm:$0xff] }
  0xa8   :  { %619 = vmatpush2.msra.mxu1 %v347_v19  ;;  %549 = vmatprep.subr.mxu0 %v282_v20  ;;  %v699_v19 = vld [vmem:[#allocation7 + $0xa0] sm:$0xff]  ;;  %v698_v20 = vld [vmem:[#allocation7 + $0x98] sm:$0xff] }
  0xa9   :  { %620 = vmatprep.subr.mxu1 %v346_v21  ;;  %550 = vmatpush2.msra.mxu0 %v281_v22  ;;  %v697_v21 = vld [vmem:[#allocation7 + $0x90] sm:$0xff]  ;;  %v696_v22 = vld [vmem:[#allocation7 + $0x88] sm:$0xff] }
  0xaa   :  { %621 = vmatpush2.msra.mxu1 %v345_v23  ;;  %551 = vmatprep.subr.mxu0 %v280_v24  ;;  %v695_v23 = vld [vmem:[#allocation7 + $0x80] sm:$0xff]  ;;  %v694_v24 = vld [vmem:[#allocation7 + $0x78] sm:$0xff] }
  0xab   :  { %622 = vmatprep.subr.mxu1 %v344_v25  ;;  %552 = vmatpush2.msra.mxu0 %v279_v26  ;;  %v693_v25 = vld [vmem:[#allocation7 + $0x70] sm:$0xff]  ;;  %v692_v26 = vld [vmem:[#allocation7 + $0x68] sm:$0xff] }
  0xac   :  { %623 = vmatpush2.msra.mxu1 %v343_v27  ;;  %553 = vmatprep.subr.mxu0 %v278_v28  ;;  %v691_v27 = vld [vmem:[#allocation7 + $0x60] sm:$0xff]  ;;  %v690_v28 = vld [vmem:[#allocation7 + $0x58] sm:$0xff] }
  0xad   :  { %624 = vmatprep.subr.mxu1 %v342_v29  ;;  %554 = vmatpush2.msra.mxu0 %v277_v30  ;;  %v689_v29 = vld [vmem:[#allocation7 + $0x50] sm:$0xff]  ;;  %v688_v30 = vld [vmem:[#allocation7 + $0x48] sm:$0xff] }
  0xae   :  { %625 = vmatpush2.msra.mxu1 %v341_v31  ;;  %555 = vmatprep.subr.mxu0 %v276_v32  ;;  %v687_v31 = vld [vmem:[#allocation7 + $0x40] sm:$0xff]  ;;  %v686_v32 = vld [vmem:[#allocation7 + $0x38] sm:$0xff] }
  0xaf   :  { %626 = vmatprep.subr.mxu1 %v340_v33  ;;  %556 = vmatpush2.msra.mxu0 %v275_v34  ;;  %v685_v33 = vld [vmem:[#allocation7 + $0x30] sm:$0xff]  ;;  %v684_v34 = vld [vmem:[#allocation7 + $0x28] sm:$0xff] }
  0xb0   :  { %627 = vmatpush2.msra.mxu1 %v339_v35  ;;  %557 = vmatprep.subr.mxu0 %v274_v36  ;;  %v683_v35 = vld [vmem:[#allocation7 + $0x20] sm:$0xff]  ;;  %v682_v36 = vld [vmem:[#allocation7 + $0x18] sm:$0xff] }
  0xb1   :  { %628 = vmatprep.subr.mxu1 %v338_v37  ;;  %558 = vmatpush2.msra.mxu0 %v273_v38  ;;  %v681_v37 = vld [vmem:[#allocation7 + $0x10] sm:$0xff]  ;;  %v680_v38 = vld [vmem:[#allocation7 + $0x8] sm:$0xff] }
  0xb2   :  { %629 = vmatpush2.msra.mxu1 %v337_v39  ;;  %559 = vmatprep.subr.mxu0 %v272_v40  ;;  %v679_v39 = vld [vmem:[#allocation7] sm:$0xff]  ;;  %v742_v40 = vld [vmem:[#allocation7 + $0x1f8] sm:$0xff] }
  0xb3   :  { %630 = vmatprep.subr.mxu1 %v336_v41  ;;  %560 = vmatpush2.msra.mxu0 %v271_v42  ;;  %v741_v41 = vld [vmem:[#allocation7 + $0x1f0] sm:$0xff]  ;;  %v740_v42 = vld [vmem:[#allocation7 + $0x1e8] sm:$0xff] }
  0xb4   :  { %631 = vmatpush2.msra.mxu1 %v335_v43  ;;  %561 = vmatprep.subr.mxu0 %v270_v44  ;;  %v739_v43 = vld [vmem:[#allocation7 + $0x1e0] sm:$0xff]  ;;  %v738_v44 = vld [vmem:[#allocation7 + $0x1d8] sm:$0xff] }
  0xb5   :  { %632 = vmatprep.subr.mxu1 %v334_v45  ;;  %562 = vmatpush2.msra.mxu0 %v269_v46  ;;  %v737_v45 = vld [vmem:[#allocation7 + $0x1d0] sm:$0xff]  ;;  %v736_v46 = vld [vmem:[#allocation7 + $0x1c8] sm:$0xff] }
  0xb6   :  { %633 = vmatpush2.msra.mxu1 %v333_v47  ;;  %563 = vmatprep.subr.mxu0 %v268_v48  ;;  %v735_v47 = vld [vmem:[#allocation7 + $0x1c0] sm:$0xff]  ;;  %v734_v48 = vld [vmem:[#allocation7 + $0x1b8] sm:$0xff] }
  0xb7   :  { %634 = vmatprep.subr.mxu1 %v332_v49  ;;  %564 = vmatpush2.msra.mxu0 %v267_v50  ;;  %v733_v49 = vld [vmem:[#allocation7 + $0x1b0] sm:$0xff]  ;;  %v732_v50 = vld [vmem:[#allocation7 + $0x1a8] sm:$0xff] }
  0xb8   :  { %635 = vmatpush2.msra.mxu1 %v331_v51  ;;  %565 = vmatprep.subr.mxu0 %v266_v52  ;;  %v731_v51 = vld [vmem:[#allocation7 + $0x1a0] sm:$0xff]  ;;  %v730_v52 = vld [vmem:[#allocation7 + $0x198] sm:$0xff] }
  0xb9   :  { %636 = vmatprep.subr.mxu1 %v330_v53  ;;  %566 = vmatpush2.msra.mxu0 %v265_v54  ;;  %v729_v53 = vld [vmem:[#allocation7 + $0x190] sm:$0xff]  ;;  %v728_v54 = vld [vmem:[#allocation7 + $0x188] sm:$0xff] }
  0xba   :  { %637 = vmatpush2.msra.mxu1 %v329_v55  ;;  %567 = vmatprep.subr.mxu0 %v264_v56  ;;  %v727_v55 = vld [vmem:[#allocation7 + $0x180] sm:$0xff]  ;;  %v726_v56 = vld [vmem:[#allocation7 + $0x178] sm:$0xff] }
  0xbb   :  { %638 = vmatprep.subr.mxu1 %v328_v57  ;;  %568 = vmatpush2.msra.mxu0 %v263_v58  ;;  %v725_v57 = vld [vmem:[#allocation7 + $0x170] sm:$0xff]  ;;  %v724_v58 = vld [vmem:[#allocation7 + $0x168] sm:$0xff] }
  0xbc   :  { %639 = vmatpush2.msra.mxu1 %v327_v59  ;;  %569 = vmatprep.subr.mxu0 %v262_v60  ;;  %v723_v59 = vld [vmem:[#allocation7 + $0x160] sm:$0xff]  ;;  %v722_v60 = vld [vmem:[#allocation7 + $0x158] sm:$0xff] }
  0xbd   :  { %640 = vmatprep.subr.mxu1 %v326_v61  ;;  %570 = vmatpush2.msra.mxu0 %v261_v62  ;;  %v721_v61 = vld [vmem:[#allocation7 + $0x150] sm:$0xff]  ;;  %v720_v62 = vld [vmem:[#allocation7 + $0x148] sm:$0xff] }
  0xbe   :  { %641 = vmatpush2.msra.mxu1 %v325_v63  ;;  %571 = vmatprep.subr.mxu0 %v260_v0  ;;  %v719_v63 = vld [vmem:[#allocation7 + $0x140] sm:$0xff]  ;;  %v718_v0 = vld [vmem:[#allocation7 + $0x138] sm:$0xff] }
  0xbf   :  { %642 = vmatprep.subr.mxu1 %v324_v1  ;;  %572 = vmatpush2.msra.mxu0 %v259_v2  ;;  %v717_v1 = vld [vmem:[#allocation7 + $0x130] sm:$0xff]  ;;  %v716_v2 = vld [vmem:[#allocation7 + $0x128] sm:$0xff] }
  0xc0   :  { %573 = vmatprep.mubr.f32.mxu0 %v96_v3  ;;  %643 = vmatpush2.msra.mxu1 %v323_v4  ;;  %v715_v3 = vld [vmem:[#allocation7 + $0x120] sm:$0xff]  ;;  %v714_v4 = vld [vmem:[#allocation7 + $0x118] sm:$0xff] }
  0xc1   :  { %644 = vmatprep.mubr.f32.mxu1 %v98_v5  ;;  %574 = vmatmul.mubr.f32.vlgmr.msra.gmra.mxu0 %v95_v6  ;;  %v713_v5 = vld [vmem:[#allocation7 + $0x110] sm:$0xff]  ;;  %v712_v6 = vld [vmem:[#allocation7 + $0x108] sm:$0xff] }
  0xc2   :  { %645 = vmatmul.mubr.f32.vlgmr.msra.gmra.mxu1 %v97_v7  ;;  %755 = vmatprep.subr.mxu0 %v710_v8  ;;  %v711_v7 = vld [vmem:[#allocation7 + $0x100] sm:$0xff]  ;;  %v975_v8 = vld [vmem:[#allocation10 + $0x3c8] sm:$0xff] }
  0xc3   :  { %756 = vmatpush1.msra.mxu0 %v709_v9  ;;  %v977_v9 = vld [vmem:[#allocation10 + $0x3d8] sm:$0xff]  ;;  %1152 = vmatprep.subr.mxu1 %v975_v8 }
  0xc4   :  { %757 = vmatprep.subr.mxu0 %v708_v10  ;;  %v974_v10 = vld [vmem:[#allocation10 + $0x3c0] sm:$0xff] }
  0xc5   :  { %758 = vmatpush1.msra.mxu0 %v707_v11  ;;  %v967_v11 = vld [vmem:[#allocation10 + $0x388] sm:$0xff]  ;;  %1153 = vmatpush1.msra.mxu1 %v974_v10 }
  0xc6   :  { %759 = vmatprep.subr.mxu0 %v706_v12  ;;  %v966_v12 = vld [vmem:[#allocation10 + $0x380] sm:$0xff]  ;;  %1154 = vmatprep.subr.mxu1 %v967_v11 }
  0xc7   :  { %760 = vmatpush1.msra.mxu0 %v705_v13  ;;  %v959_v13 = vld [vmem:[#allocation10 + $0x348] sm:$0xff]  ;;  %1155 = vmatpush1.msra.mxu1 %v966_v12  ;;  %v976_v12 = vld [vmem:[#allocation10 + $0x3d0] sm:$0xff] }
  0xc8   :  { %761 = vmatprep.subr.mxu0 %v704_v14  ;;  %v958_v14 = vld [vmem:[#allocation10 + $0x340] sm:$0xff]  ;;  %1156 = vmatprep.subr.mxu1 %v959_v13 }
  0xc9   :  { %762 = vmatpush1.msra.mxu0 %v703_v15  ;;  %v951_v15 = vld [vmem:[#allocation10 + $0x308] sm:$0xff]  ;;  %1157 = vmatpush1.msra.mxu1 %v958_v14  ;;  %v969_v14 = vld [vmem:[#allocation10 + $0x398] sm:$0xff] }
  0xca   :  { %763 = vmatprep.subr.mxu0 %v702_v16  ;;  %v950_v16 = vld [vmem:[#allocation10 + $0x300] sm:$0xff]  ;;  %1158 = vmatprep.subr.mxu1 %v951_v15  ;;  %v968_v15 = vld [vmem:[#allocation10 + $0x390] sm:$0xff] }
  0xcb   :  { %764 = vmatpush1.msra.mxu0 %v701_v17  ;;  %v943_v17 = vld [vmem:[#allocation10 + $0x2c8] sm:$0xff]  ;;  %1159 = vmatpush1.msra.mxu1 %v950_v16  ;;  %v961_v16 = vld [vmem:[#allocation10 + $0x358] sm:$0xff] }
  0xcc   :  { %765 = vmatprep.subr.mxu0 %v700_v18  ;;  %v942_v18 = vld [vmem:[#allocation10 + $0x2c0] sm:$0xff]  ;;  %1160 = vmatprep.subr.mxu1 %v943_v17  ;;  %v960_v17 = vld [vmem:[#allocation10 + $0x350] sm:$0xff] }
  0xcd   :  { %766 = vmatpush1.msra.mxu0 %v699_v19  ;;  %v935_v19 = vld [vmem:[#allocation10 + $0x288] sm:$0xff]  ;;  %1161 = vmatpush1.msra.mxu1 %v942_v18  ;;  %v953_v18 = vld [vmem:[#allocation10 + $0x318] sm:$0xff] }
  0xce   :  { %767 = vmatprep.subr.mxu0 %v698_v20  ;;  %v934_v20 = vld [vmem:[#allocation10 + $0x280] sm:$0xff]  ;;  %1162 = vmatprep.subr.mxu1 %v935_v19  ;;  %v952_v19 = vld [vmem:[#allocation10 + $0x310] sm:$0xff] }
  0xcf   :  { %768 = vmatpush1.msra.mxu0 %v697_v21  ;;  %v927_v21 = vld [vmem:[#allocation10 + $0x248] sm:$0xff]  ;;  %1163 = vmatpush1.msra.mxu1 %v934_v20  ;;  %v945_v20 = vld [vmem:[#allocation10 + $0x2d8] sm:$0xff] }
  0xd0   :  { %769 = vmatprep.subr.mxu0 %v696_v22  ;;  %v926_v22 = vld [vmem:[#allocation10 + $0x240] sm:$0xff]  ;;  %1164 = vmatprep.subr.mxu1 %v927_v21  ;;  %v944_v21 = vld [vmem:[#allocation10 + $0x2d0] sm:$0xff] }
  0xd1   :  { %770 = vmatpush1.msra.mxu0 %v695_v23  ;;  %v919_v23 = vld [vmem:[#allocation10 + $0x208] sm:$0xff]  ;;  %1165 = vmatpush1.msra.mxu1 %v926_v22  ;;  %v937_v22 = vld [vmem:[#allocation10 + $0x298] sm:$0xff] }
  0xd2   :  { %771 = vmatprep.subr.mxu0 %v694_v24  ;;  %v918_v24 = vld [vmem:[#allocation10 + $0x200] sm:$0xff]  ;;  %1166 = vmatprep.subr.mxu1 %v919_v23  ;;  %v936_v23 = vld [vmem:[#allocation10 + $0x290] sm:$0xff] }
  0xd3   :  { %772 = vmatpush1.msra.mxu0 %v693_v25  ;;  %v911_v25 = vld [vmem:[#allocation10 + $0x1c8] sm:$0xff]  ;;  %1167 = vmatpush1.msra.mxu1 %v918_v24  ;;  %v929_v24 = vld [vmem:[#allocation10 + $0x258] sm:$0xff] }
  0xd4   :  { %773 = vmatprep.subr.mxu0 %v692_v26  ;;  %v910_v26 = vld [vmem:[#allocation10 + $0x1c0] sm:$0xff]  ;;  %1168 = vmatprep.subr.mxu1 %v911_v25  ;;  %v928_v25 = vld [vmem:[#allocation10 + $0x250] sm:$0xff] }
  0xd5   :  { %774 = vmatpush1.msra.mxu0 %v691_v27  ;;  %v903_v27 = vld [vmem:[#allocation10 + $0x188] sm:$0xff]  ;;  %1169 = vmatpush1.msra.mxu1 %v910_v26  ;;  %v921_v26 = vld [vmem:[#allocation10 + $0x218] sm:$0xff] }
  0xd6   :  { %775 = vmatprep.subr.mxu0 %v690_v28  ;;  %v902_v28 = vld [vmem:[#allocation10 + $0x180] sm:$0xff]  ;;  %1170 = vmatprep.subr.mxu1 %v903_v27  ;;  %v920_v27 = vld [vmem:[#allocation10 + $0x210] sm:$0xff] }
  0xd7   :  { %776 = vmatpush1.msra.mxu0 %v689_v29  ;;  %v895_v29 = vld [vmem:[#allocation10 + $0x148] sm:$0xff]  ;;  %1171 = vmatpush1.msra.mxu1 %v902_v28  ;;  %v913_v28 = vld [vmem:[#allocation10 + $0x1d8] sm:$0xff] }
  0xd8   :  { %777 = vmatprep.subr.mxu0 %v688_v30  ;;  %1172 = vmatprep.subr.mxu1 %v895_v29  ;;  %v357_v30 = vlaneseq  ;;  %v912_v29 = vld [vmem:[#allocation10 + $0x1d0] sm:$0xff] }
  0xd9   :  { %778 = vmatpush1.msra.mxu0 %v687_v31 }
  0xda   :  { %779 = vmatprep.subr.mxu0 %v686_v32  ;;  %v1686_v31 = vshrl.u32 %v357_v30, 7  ;;  %v905_v30 = vld [vmem:[#allocation10 + $0x198] sm:$0xff] }
  0xdb   :  { %780 = vmatpush1.msra.mxu0 %v685_v33  ;;  %v355_v33 = vld [vmem:[%s1723_s2] sm:$0x3] }
  0xdc   :  { %781 = vmatprep.subr.mxu0 %v684_v34  ;;  %v1689_v32 = vsub.s32 0, %v1686_v31  ;;  %v1695_v34 = vsub.s32 1, %v1686_v31 }
  0xdd   :  { %782 = vmatpush1.msra.mxu0 %v683_v35 }
  0xde   :  { %783 = vmatprep.subr.mxu0 %v682_v36  ;;  %v360_v36 = vrot.slane %v355_v33, %v1689_v32 }
  0xdf   :  { %784 = vmatpush1.msra.mxu0 %v681_v37  ;;  %v364_v37 = vrot.slane %v355_v33, %v1695_v34  ;;  %v904_v33 = vld [vmem:[#allocation10 + $0x190] sm:$0xff] }
  0xe0   :  { %785 = vmatprep.subr.mxu0 %v680_v38 }
  0xe1   :  { %786 = vmatpush1.msra.mxu0 %v679_v39 }
  0xe2   :  { %787 = vmatprep.subr.mxu0 %v742_v40 }
  0xe3   :  { %788 = vmatpush2.msra.mxu0 %v741_v41 }
  0xe4   :  { %789 = vmatprep.subr.mxu0 %v740_v42 }
  0xe5   :  { %790 = vmatpush2.msra.mxu0 %v739_v43 }
  0xe6   :  { %791 = vmatprep.subr.mxu0 %v738_v44 }
  0xe7   :  { %792 = vmatpush2.msra.mxu0 %v737_v45 }
  0xe8   :  { %793 = vmatprep.subr.mxu0 %v736_v46 }
  0xe9   :  { %794 = vmatpush2.msra.mxu0 %v735_v47 }
  0xea   :  { %795 = vmatprep.subr.mxu0 %v734_v48 }
  0xeb   :  { %796 = vmatpush2.msra.mxu0 %v733_v49 }
  0xec   :  { %797 = vmatprep.subr.mxu0 %v732_v50 }
  0xed   :  { %798 = vmatpush2.msra.mxu0 %v731_v51 }
  0xee   :  { %799 = vmatprep.subr.mxu0 %v730_v52 }
  0xef   :  { %800 = vmatpush2.msra.mxu0 %v729_v53 }
  0xf0   :  { %801 = vmatprep.subr.mxu0 %v728_v54 }
  0xf1   :  { %802 = vmatpush2.msra.mxu0 %v727_v55 }
  0xf2   :  { %803 = vmatprep.subr.mxu0 %v726_v56 }
  0xf3   :  { %804 = vmatpush2.msra.mxu0 %v725_v57 }
  0xf4   :  { %805 = vmatprep.subr.mxu0 %v724_v58 }
  0xf5   :  { %806 = vmatpush2.msra.mxu0 %v723_v59 }
  0xf6   :  { %807 = vmatprep.subr.mxu0 %v722_v60 }
  0xf7   :  { %808 = vmatpush2.msra.mxu0 %v721_v61 }
  0xf8   :  { %809 = vmatprep.subr.mxu0 %v720_v62 }
  0xf9   :  { %810 = vmatpush2.msra.mxu0 %v719_v63 }
  0xfa   :  { %811 = vmatprep.subr.mxu0 %v718_v0 }
  0xfb   :  { %812 = vmatpush2.msra.mxu0 %v717_v1 }
  0xfc   :  { %813 = vmatprep.subr.mxu0 %v716_v2 }
  0xfd   :  { %814 = vmatpush2.msra.mxu0 %v715_v3 }
  0xfe   :  { %815 = vmatprep.subr.mxu0 %v714_v4 }
  0xff   :  { %816 = vmatpush2.msra.mxu0 %v713_v5 }
 0x100   :  { %817 = vmatprep.subr.mxu0 %v712_v6 }
 0x101   :  { %818 = vmatpush2.msra.mxu0 %v711_v7 }
 0x102   :  { %1223 = vmatprep.subr.mxu0 %v977_v9 }
 0x13f   :  { %v433_v35 = vpop.f32.mrf.mxu0 }
 0x140   :  { %v434_v40 = vadd.f32 %v433_v35, %v360_v36  ;;  %v897_v35 = vld [vmem:[#allocation10 + $0x158] sm:$0xff]  ;;  %v894_v36 = vld [vmem:[#allocation10 + $0x140] sm:$0xff] }
 0x141   :  { %v504_v38 = vpop.f32.mrf.mxu1  ;;  %v435_v39 = vpop.f32.mrf.mxu0  ;;  %1173 = vmatpush1.msra.mxu1 %v894_v36  ;;  %v1032_v36 = vld [vmem:[#allocation10 + $0x590] sm:$0xff] }
 0x142   :  { %v436_v41 = vadd.f32 %v435_v39, %v364_v37  ;;  %v505_v43 = vadd.f32 %v504_v38, %v434_v40  ;;  %v896_v37 = vld [vmem:[#allocation10 + $0x150] sm:$0xff]  ;;  %v887_v38 = vld [vmem:[#allocation10 + $0x108] sm:$0xff]  ;;  %v889_v39 = vld [vmem:[#allocation10 + $0x118] sm:$0xff] }
 0x143   :  { %v506_v42 = vpop.f32.mrf.mxu1  ;;  %1174 = vmatprep.subr.mxu1 %v887_v38  ;;  %v886_v40 = vld [vmem:[#allocation10 + $0x100] sm:$0xff]  ;;  %v1025_v38 = vld [vmem:[#allocation10 + $0x558] sm:$0xff] }
 0x144   :  { %v507_v46 = vadd.f32 %v506_v42, %v436_v41  ;;  %v888_v41 = vld [vmem:[#allocation10 + $0x110] sm:$0xff]  ;;  %1175 = vmatpush1.msra.mxu1 %v886_v40  ;;  %v879_v42 = vld [vmem:[#allocation10 + $0xc8] sm:$0xff] }
 0x145   :  { %1176 = vmatprep.subr.mxu1 %v879_v42  ;;  %v1024_v40 = vld [vmem:[#allocation10 + $0x550] sm:$0xff]  ;;  %v1017_v42 = vld [vmem:[#allocation10 + $0x518] sm:$0xff] }
 0x181   :  { %v575_v44 = vpop.f32.mrf.mxu0 }
 0x182   :  { %v646_v45 = vpop.f32.mrf.mxu1  ;;  %v576_v47 = vadd.f32 %v575_v44, %v505_v43  ;;  %v881_v43 = vld [vmem:[#allocation10 + $0xd8] sm:$0xff]  ;;  %v878_v44 = vld [vmem:[#allocation10 + $0xc0] sm:$0xff] }
 0x183   :  { %v577_v48 = vpop.f32.mrf.mxu0  ;;  %1177 = vmatpush1.msra.mxu1 %v878_v44  ;;  %v1016_v44 = vld [vmem:[#allocation10 + $0x510] sm:$0xff] }
 0x184   :  { %v647_v49 = vadd.f32 %v646_v45, %v576_v47  ;;  %v578_v50 = vadd.f32 %v577_v48, %v507_v46  ;;  %v648_v51 = vpop.f32.mrf.mxu1  ;;  %v880_v45 = vld [vmem:[#allocation10 + $0xd0] sm:$0xff]  ;;  %v871_v46 = vld [vmem:[#allocation10 + $0x88] sm:$0xff]  ;;  %v873_v47 = vld [vmem:[#allocation10 + $0x98] sm:$0xff] }
 0x185   :  { %1178 = vmatprep.subr.mxu1 %v871_v46  ;;  %v870_v48 = vld [vmem:[#allocation10 + $0x80] sm:$0xff]  ;;  %v1009_v46 = vld [vmem:[#allocation10 + $0x4d8] sm:$0xff] }
 0x186   :  { %v653_v52 = vmin.f32 %v647_v49, 20.0  ;;  %v649_v53 = vadd.f32 %v648_v51, %v578_v50  ;;  %vm651_vm3 = vcmp.gt.f32.partialorder %v647_v49, 20.0  ;;  %1179 = vmatpush1.msra.mxu1 %v870_v48  ;;  %v863_v50 = vld [vmem:[#allocation10 + $0x48] sm:$0xff]  ;;  %v865_v51 = vld [vmem:[#allocation10 + $0x58] sm:$0xff]  ;;  %v1008_v48 = vld [vmem:[#allocation10 + $0x4d0] sm:$0xff] }
 0x187   :  { %1180 = vmatprep.subr.mxu1 %v863_v50  ;;  %v1001_v50 = vld [vmem:[#allocation10 + $0x498] sm:$0xff] }
 0x188   :  { %v655_v54 = vmul.f32 1.442695, %v653_v52  ;;  %v654_v55 = vmin.f32 %v649_v53, 20.0  ;;  %vm652_vm2 = vcmp.gt.f32.partialorder %v649_v53, 20.0  ;;  %v862_v52 = vld [vmem:[#allocation10 + $0x40] sm:$0xff] }
 0x189   :  { %1181 = vmatpush1.msra.mxu1 %v862_v52  ;;  %v1000_v52 = vld [vmem:[#allocation10 + $0x490] sm:$0xff] }
 0x18a   :  { %1471 = vpow2.f32 %v655_v54  ;;  %v657_v56 = vmul.f32 1.442695, %v654_v55  ;;  %v855_v54 = vld [vmem:[#allocation10 + $0x8] sm:$0xff]  ;;  %v857_v55 = vld [vmem:[#allocation10 + $0x18] sm:$0xff] }
 0x18b   :  { %1182 = vmatprep.subr.mxu1 %v855_v54  ;;  %v993_v54 = vld [vmem:[#allocation10 + $0x458] sm:$0xff] }
 0x18c   :  { %1473 = vpow2.f32 %v657_v56  ;;  %v854_v56 = vld [vmem:[#allocation10] sm:$0xff] }
 0x18d   :  { %1183 = vmatpush1.msra.mxu1 %v854_v56  ;;  %v992_v56 = vld [vmem:[#allocation10 + $0x450] sm:$0xff] }
 0x197   :  { %v1472_v57 = vpop.eup %1471 }
 0x198   :  { %v659_v58 = vadd.f32 1.0, %v1472_v57  ;;  %v662_v61 = vmul.f32 -0.5, %v1472_v57  ;;  %v665_v1 = vand.u32 2147483647, %v1472_v57 }
 0x199   :  { %v1474_v59 = vpop.eup %1473 }
 0x19a   :  { %v668_v60 = vadd.f32 1.0, %v1474_v59  ;;  %1475 = vlog2.f32 %v659_v58  ;;  %v671_v62 = vmul.f32 -0.5, %v1474_v59  ;;  %v663_v63 = vadd.f32 1.0, %v662_v61  ;;  %v1103_v58 = vld [vmem:[#allocation10 + $0x7c8] sm:$0xff]  ;;  %v1104_v61 = vld [vmem:[#allocation10 + $0x7d0] sm:$0xff] }
 0x19b   :  { %v674_v3 = vand.u32 2147483647, %v1474_v59  ;;  %vm666_vm0 = vcmp.lt.f32.partialorder %v665_v1, 0.0004427343  ;;  %1184 = vmatprep.subr.mxu1 %v1103_v58  ;;  %v1096_v1 = vld [vmem:[#allocation10 + $0x790] sm:$0xff]  ;;  %v985_v58 = vld [vmem:[#allocation10 + $0x418] sm:$0xff] }
 0x19c   :  { %1477 = vlog2.f32 %v668_v60  ;;  %v672_v0 = vadd.f32 1.0, %v671_v62  ;;  %v664_v6 = vmul.f32 %v1472_v57, %v663_v63  ;;  %v856_v57 = vld [vmem:[#allocation10 + $0x10] sm:$0xff]  ;;  %v1102_v60 = vld [vmem:[#allocation10 + $0x7c0] sm:$0xff]  ;;  %v1095_v62 = vld [vmem:[#allocation10 + $0x788] sm:$0xff] }
 0x19d   :  { %vm675_vm1 = vcmp.lt.f32.partialorder %v674_v3, 0.0004427343  ;;  %v1097_v63 = vld [vmem:[#allocation10 + $0x798] sm:$0xff]  ;;  %1185 = vmatpush2.msra.mxu1 %v1102_v60  ;;  %v984_v60 = vld [vmem:[#allocation10 + $0x410] sm:$0xff] }
 0x19e   :  { %v673_v8 = vmul.f32 %v1474_v59, %v672_v0  ;;  %v1105_v59 = vld [vmem:[#allocation10 + $0x7d8] sm:$0xff]  ;;  %v1094_v0 = vld [vmem:[#allocation10 + $0x780] sm:$0xff]  ;;  %1186 = vmatprep.subr.mxu1 %v1095_v62 }
 0x19f   :  { %v1089_v3 = vld [vmem:[#allocation10 + $0x758] sm:$0xff]  ;;  %1187 = vmatpush2.msra.mxu1 %v1094_v0 }
 0x1a0   :  { %v981_v62 = vld [vmem:[#allocation10 + $0x3f8] sm:$0xff] }
 0x1a7   :  { %v1476_v2 = vpop.eup %1475 }
 0x1a8   :  { %v661_v4 = vmul.f32 0.6931472, %v1476_v2  ;;  %v1087_v2 = vld [vmem:[#allocation10 + $0x748] sm:$0xff] }
 0x1a9   :  { %v1478_v5 = vpop.eup %1477  ;;  %1188 = vmatprep.subr.mxu1 %v1087_v2 }
 0x1aa   :  { %v670_v7 = vmul.f32 0.6931472, %v1478_v5  ;;  %v667_v9 = vsel %vm666_vm0, %v664_v6, %v661_v4  ;;  %v1086_v4 = vld [vmem:[#allocation10 + $0x740] sm:$0xff]  ;;  %v1088_v5 = vld [vmem:[#allocation10 + $0x750] sm:$0xff]  ;;  %v1079_v6 = vld [vmem:[#allocation10 + $0x708] sm:$0xff] }
 0x1ab   :  { %v677_v13 = vsel %vm651_vm3, %v647_v49, %v667_v9  ;;  %v872_v49 = vld [vmem:[#allocation10 + $0x90] sm:$0xff]  ;;  %1189 = vmatpush2.msra.mxu1 %v1086_v4 }
 0x1ac   :  { %v676_v10 = vsel %vm675_vm1, %v673_v8, %v670_v7  ;;  %v1081_v7 = vld [vmem:[#allocation10 + $0x718] sm:$0xff]  ;;  %v1078_v8 = vld [vmem:[#allocation10 + $0x700] sm:$0xff]  ;;  %v1080_v9 = vld [vmem:[#allocation10 + $0x710] sm:$0xff]  ;;  %1190 = vmatprep.subr.mxu1 %v1079_v6 }
 0x1ad   :  { %v678_v11 = vsel %vm652_vm2, %v649_v53, %v676_v10  ;;  %v864_v53 = vld [vmem:[#allocation10 + $0x50] sm:$0xff]  ;;  %v1071_v10 = vld [vmem:[#allocation10 + $0x6c8] sm:$0xff]  ;;  %1191 = vmatpush2.msra.mxu1 %v1078_v8 }
 0x1ae   :  { %819 = vmatprep.mubr.f32.mxu0 %v678_v11  ;;  %v1073_v11 = vld [vmem:[#allocation10 + $0x6d8] sm:$0xff]  ;;  %1192 = vmatprep.subr.mxu1 %v1071_v10 }
 0x1af   :  { %820 = vmatmul.mubr.f32.vlgmr.msra.gmra.mxu0 %v677_v13  ;;  %v1072_v13 = vld [vmem:[#allocation10 + $0x6d0] sm:$0xff] }
 0x1b0   :  { %1224 = vmatpush1.msra.mxu0 %v976_v12  ;;  %v1070_v12 = vld [vmem:[#allocation10 + $0x6c0] sm:$0xff] }
 0x1b1   :  { %1225 = vmatprep.subr.mxu0 %v969_v14  ;;  %v1063_v14 = vld [vmem:[#allocation10 + $0x688] sm:$0xff]  ;;  %1193 = vmatpush2.msra.mxu1 %v1070_v12 }
 0x1b2   :  { %1226 = vmatpush1.msra.mxu0 %v968_v15  ;;  %v1065_v15 = vld [vmem:[#allocation10 + $0x698] sm:$0xff]  ;;  %1194 = vmatprep.subr.mxu1 %v1063_v14 }
 0x1b3   :  { %1227 = vmatprep.subr.mxu0 %v961_v16  ;;  %v1062_v16 = vld [vmem:[#allocation10 + $0x680] sm:$0xff] }
 0x1b4   :  { %1228 = vmatpush1.msra.mxu0 %v960_v17  ;;  %v1064_v17 = vld [vmem:[#allocation10 + $0x690] sm:$0xff]  ;;  %1195 = vmatpush2.msra.mxu1 %v1062_v16 }
 0x1b5   :  { %1229 = vmatprep.subr.mxu0 %v953_v18  ;;  %v1055_v18 = vld [vmem:[#allocation10 + $0x648] sm:$0xff] }
 0x1b6   :  { %1230 = vmatpush1.msra.mxu0 %v952_v19  ;;  %v1057_v19 = vld [vmem:[#allocation10 + $0x658] sm:$0xff]  ;;  %1196 = vmatprep.subr.mxu1 %v1055_v18 }
 0x1b7   :  { %1231 = vmatprep.subr.mxu0 %v945_v20  ;;  %v1054_v20 = vld [vmem:[#allocation10 + $0x640] sm:$0xff] }
 0x1b8   :  { %1232 = vmatpush1.msra.mxu0 %v944_v21  ;;  %v1056_v21 = vld [vmem:[#allocation10 + $0x650] sm:$0xff]  ;;  %1197 = vmatpush2.msra.mxu1 %v1054_v20 }
 0x1b9   :  { %1233 = vmatprep.subr.mxu0 %v937_v22  ;;  %v1047_v22 = vld [vmem:[#allocation10 + $0x608] sm:$0xff] }
 0x1ba   :  { %1234 = vmatpush1.msra.mxu0 %v936_v23  ;;  %v1049_v23 = vld [vmem:[#allocation10 + $0x618] sm:$0xff]  ;;  %1198 = vmatprep.subr.mxu1 %v1047_v22 }
 0x1bb   :  { %1235 = vmatprep.subr.mxu0 %v929_v24  ;;  %v1046_v24 = vld [vmem:[#allocation10 + $0x600] sm:$0xff] }
 0x1bc   :  { %1236 = vmatpush1.msra.mxu0 %v928_v25  ;;  %v1048_v25 = vld [vmem:[#allocation10 + $0x610] sm:$0xff]  ;;  %1199 = vmatpush2.msra.mxu1 %v1046_v24 }
 0x1bd   :  { %1237 = vmatprep.subr.mxu0 %v921_v26  ;;  %v1039_v26 = vld [vmem:[#allocation10 + $0x5c8] sm:$0xff] }
 0x1be   :  { %1238 = vmatpush1.msra.mxu0 %v920_v27  ;;  %v1041_v27 = vld [vmem:[#allocation10 + $0x5d8] sm:$0xff]  ;;  %1200 = vmatprep.subr.mxu1 %v1039_v26 }
 0x1bf   :  { %1239 = vmatprep.subr.mxu0 %v913_v28  ;;  %v1038_v28 = vld [vmem:[#allocation10 + $0x5c0] sm:$0xff] }
 0x1c0   :  { %1240 = vmatpush1.msra.mxu0 %v912_v29  ;;  %v1040_v29 = vld [vmem:[#allocation10 + $0x5d0] sm:$0xff]  ;;  %1201 = vmatpush2.msra.mxu1 %v1038_v28 }
 0x1c1   :  { %1241 = vmatprep.subr.mxu0 %v905_v30  ;;  %v1031_v30 = vld [vmem:[#allocation10 + $0x588] sm:$0xff] }
 0x1c2   :  { %1242 = vmatpush1.msra.mxu0 %v904_v33  ;;  %v1033_v33 = vld [vmem:[#allocation10 + $0x598] sm:$0xff]  ;;  %1202 = vmatprep.subr.mxu1 %v1031_v30  ;;  %v980_v30 = vld [vmem:[#allocation10 + $0x3f0] sm:$0xff] }
 0x1c3   :  { %1243 = vmatprep.subr.mxu0 %v897_v35  ;;  %v1030_v35 = vld [vmem:[#allocation10 + $0x580] sm:$0xff] }
 0x1c4   :  { %1244 = vmatpush1.msra.mxu0 %v896_v37  ;;  %v1023_v37 = vld [vmem:[#allocation10 + $0x548] sm:$0xff]  ;;  %1203 = vmatpush2.msra.mxu1 %v1030_v35 }
 0x1c5   :  { %1245 = vmatprep.subr.mxu0 %v889_v39  ;;  %v1022_v39 = vld [vmem:[#allocation10 + $0x540] sm:$0xff]  ;;  %1204 = vmatprep.subr.mxu1 %v1023_v37  ;;  %v971_v35 = vld [vmem:[#allocation10 + $0x3a8] sm:$0xff] }
 0x1c6   :  { %1246 = vmatpush1.msra.mxu0 %v888_v41  ;;  %v1015_v41 = vld [vmem:[#allocation10 + $0x508] sm:$0xff]  ;;  %1205 = vmatpush2.msra.mxu1 %v1022_v39  ;;  %v970_v37 = vld [vmem:[#allocation10 + $0x3a0] sm:$0xff] }
 0x1c7   :  { %1247 = vmatprep.subr.mxu0 %v881_v43  ;;  %v1014_v43 = vld [vmem:[#allocation10 + $0x500] sm:$0xff]  ;;  %1206 = vmatprep.subr.mxu1 %v1015_v41  ;;  %v963_v39 = vld [vmem:[#allocation10 + $0x368] sm:$0xff] }
 0x1c8   :  { %1248 = vmatpush1.msra.mxu0 %v880_v45  ;;  %v1007_v45 = vld [vmem:[#allocation10 + $0x4c8] sm:$0xff]  ;;  %1207 = vmatpush2.msra.mxu1 %v1014_v43  ;;  %v962_v41 = vld [vmem:[#allocation10 + $0x360] sm:$0xff] }
 0x1c9   :  { %1249 = vmatprep.subr.mxu0 %v873_v47  ;;  %v1006_v47 = vld [vmem:[#allocation10 + $0x4c0] sm:$0xff]  ;;  %1208 = vmatprep.subr.mxu1 %v1007_v45  ;;  %v955_v43 = vld [vmem:[#allocation10 + $0x328] sm:$0xff] }
 0x1ca   :  { %1250 = vmatpush1.msra.mxu0 %v872_v49  ;;  %v999_v49 = vld [vmem:[#allocation10 + $0x488] sm:$0xff]  ;;  %1209 = vmatpush2.msra.mxu1 %v1006_v47  ;;  %v954_v45 = vld [vmem:[#allocation10 + $0x320] sm:$0xff] }
 0x1cb   :  { %1251 = vmatprep.subr.mxu0 %v865_v51  ;;  %v998_v51 = vld [vmem:[#allocation10 + $0x480] sm:$0xff]  ;;  %1210 = vmatprep.subr.mxu1 %v999_v49  ;;  %v947_v47 = vld [vmem:[#allocation10 + $0x2e8] sm:$0xff] }
 0x1cc   :  { %1252 = vmatpush1.msra.mxu0 %v864_v53  ;;  %v991_v53 = vld [vmem:[#allocation10 + $0x448] sm:$0xff]  ;;  %1211 = vmatpush2.msra.mxu1 %v998_v51  ;;  %v946_v49 = vld [vmem:[#allocation10 + $0x2e0] sm:$0xff] }
 0x1cd   :  { %1253 = vmatprep.subr.mxu0 %v857_v55  ;;  %v990_v55 = vld [vmem:[#allocation10 + $0x440] sm:$0xff]  ;;  %1212 = vmatprep.subr.mxu1 %v991_v53  ;;  %v939_v51 = vld [vmem:[#allocation10 + $0x2a8] sm:$0xff] }
 0x1ce   :  { %1254 = vmatpush1.msra.mxu0 %v856_v57  ;;  %v983_v57 = vld [vmem:[#allocation10 + $0x408] sm:$0xff]  ;;  %1213 = vmatpush2.msra.mxu1 %v990_v55  ;;  %v938_v53 = vld [vmem:[#allocation10 + $0x2a0] sm:$0xff] }
 0x1cf   :  { %1255 = vmatprep.subr.mxu0 %v1105_v59  ;;  %v982_v59 = vld [vmem:[#allocation10 + $0x400] sm:$0xff]  ;;  %1214 = vmatprep.subr.mxu1 %v983_v57  ;;  %v931_v55 = vld [vmem:[#allocation10 + $0x268] sm:$0xff] }
 0x1d0   :  { %1256 = vmatpush2.msra.mxu0 %v1104_v61  ;;  %1215 = vmatpush2.msra.mxu1 %v982_v59  ;;  %v979_v61 = vld [vmem:[#allocation10 + $0x3e8] sm:$0xff]  ;;  %v930_v57 = vld [vmem:[#allocation10 + $0x260] sm:$0xff] }
 0x1d1   :  { %1257 = vmatprep.subr.mxu0 %v1097_v63  ;;  %1294 = vmatprep.subr.mxu1 %v979_v61  ;;  %v743_v63 = vld [vmem:[#allocation8] sm:$0x3]  ;;  %v923_v59 = vld [vmem:[#allocation10 + $0x228] sm:$0xff]  ;;  %v922_v61 = vld [vmem:[#allocation10 + $0x220] sm:$0xff] }
 0x1d2   :  { %1258 = vmatpush2.msra.mxu0 %v1096_v1  ;;  %v748_v0 = vrot.slane %v743_v63, %v1689_v32  ;;  %v752_v1 = vrot.slane %v743_v63, %v1695_v34  ;;  %v915_v63 = vld [vmem:[#allocation10 + $0x1e8] sm:$0xff] }
 0x1d3   :  { %1259 = vmatprep.subr.mxu0 %v1089_v3 }
 0x1d4   :  { %1260 = vmatpush2.msra.mxu0 %v1088_v5 }
 0x1d5   :  { %1261 = vmatprep.subr.mxu0 %v1081_v7 }
 0x1d6   :  { %1262 = vmatpush2.msra.mxu0 %v1080_v9 }
 0x1d7   :  { %1263 = vmatprep.subr.mxu0 %v1073_v11 }
 0x1d8   :  { %1264 = vmatpush2.msra.mxu0 %v1072_v13 }
 0x1d9   :  { %1265 = vmatprep.subr.mxu0 %v1065_v15 }
 0x1da   :  { %1266 = vmatpush2.msra.mxu0 %v1064_v17 }
 0x1db   :  { %1267 = vmatprep.subr.mxu0 %v1057_v19 }
 0x1dc   :  { %1268 = vmatpush2.msra.mxu0 %v1056_v21 }
 0x1dd   :  { %1269 = vmatprep.subr.mxu0 %v1049_v23 }
 0x1de   :  { %1270 = vmatpush2.msra.mxu0 %v1048_v25 }
 0x1df   :  { %1271 = vmatprep.subr.mxu0 %v1041_v27 }
 0x1e0   :  { %1272 = vmatpush2.msra.mxu0 %v1040_v29  ;;  %v978_v29 = vld [vmem:[#allocation10 + $0x3e0] sm:$0xff] }
 0x1e1   :  { %1273 = vmatprep.subr.mxu0 %v1033_v33 }
 0x1e2   :  { %1274 = vmatpush2.msra.mxu0 %v1032_v36  ;;  %v973_v36 = vld [vmem:[#allocation10 + $0x3b8] sm:$0xff] }
 0x1e3   :  { %1275 = vmatprep.subr.mxu0 %v1025_v38  ;;  %v972_v38 = vld [vmem:[#allocation10 + $0x3b0] sm:$0xff] }
 0x1e4   :  { %1276 = vmatpush2.msra.mxu0 %v1024_v40  ;;  %v965_v40 = vld [vmem:[#allocation10 + $0x378] sm:$0xff] }
 0x1e5   :  { %1277 = vmatprep.subr.mxu0 %v1017_v42  ;;  %v964_v42 = vld [vmem:[#allocation10 + $0x370] sm:$0xff] }
 0x1e6   :  { %1278 = vmatpush2.msra.mxu0 %v1016_v44  ;;  %v957_v44 = vld [vmem:[#allocation10 + $0x338] sm:$0xff] }
 0x1e7   :  { %1279 = vmatprep.subr.mxu0 %v1009_v46  ;;  %v956_v46 = vld [vmem:[#allocation10 + $0x330] sm:$0xff] }
 0x1e8   :  { %1280 = vmatpush2.msra.mxu0 %v1008_v48  ;;  %v949_v48 = vld [vmem:[#allocation10 + $0x2f8] sm:$0xff] }
 0x1e9   :  { %1281 = vmatprep.subr.mxu0 %v1001_v50  ;;  %v948_v50 = vld [vmem:[#allocation10 + $0x2f0] sm:$0xff] }
 0x1ea   :  { %1282 = vmatpush2.msra.mxu0 %v1000_v52  ;;  %v941_v52 = vld [vmem:[#allocation10 + $0x2b8] sm:$0xff] }
 0x1eb   :  { %1283 = vmatprep.subr.mxu0 %v993_v54  ;;  %v940_v54 = vld [vmem:[#allocation10 + $0x2b0] sm:$0xff] }
 0x1ec   :  { %1284 = vmatpush2.msra.mxu0 %v992_v56  ;;  %v933_v56 = vld [vmem:[#allocation10 + $0x278] sm:$0xff] }
 0x1ed   :  { %1285 = vmatprep.subr.mxu0 %v985_v58  ;;  %v932_v58 = vld [vmem:[#allocation10 + $0x270] sm:$0xff] }
 0x1ee   :  { %1286 = vmatpush2.msra.mxu0 %v984_v60  ;;  %v925_v60 = vld [vmem:[#allocation10 + $0x238] sm:$0xff] }
 0x1ef   :  { %1365 = vmatprep.subr.mxu0 %v981_v62  ;;  %v924_v62 = vld [vmem:[#allocation10 + $0x230] sm:$0xff] }
 0x26f   :  { %v821_v2 = vpop.f32.mrf.mxu0 }
 0x270   :  { %v822_v3 = vadd.f32 %v821_v2, %v748_v0  ;;  %v917_v0 = vld [vmem:[#allocation10 + $0x1f8] sm:$0xff]  ;;  %v916_v2 = vld [vmem:[#allocation10 + $0x1f0] sm:$0xff] }
 0x271   :  { %v823_v4 = vpop.f32.mrf.mxu0 }
 0x272   :  { %v828_v5 = vmin.f32 %v822_v3, 20.0  ;;  %v824_v6 = vadd.f32 %v823_v4, %v752_v1  ;;  %vm826_vm7 = vcmp.gt.f32.partialorder %v822_v3, 20.0  ;;  %v914_v1 = vld [vmem:[#allocation10 + $0x1e0] sm:$0xff]  ;;  %v909_v4 = vld [vmem:[#allocation10 + $0x1b8] sm:$0xff] }
 0x274   :  { %v830_v7 = vmul.f32 1.442695, %v828_v5  ;;  %v829_v8 = vmin.f32 %v824_v6, 20.0  ;;  %vm827_vm6 = vcmp.gt.f32.partialorder %v824_v6, 20.0  ;;  %v906_v5 = vld [vmem:[#allocation10 + $0x1a0] sm:$0xff] }
 0x276   :  { %1479 = vpow2.f32 %v830_v7  ;;  %v832_v9 = vmul.f32 1.442695, %v829_v8  ;;  %v899_v7 = vld [vmem:[#allocation10 + $0x168] sm:$0xff]  ;;  %v901_v8 = vld [vmem:[#allocation10 + $0x178] sm:$0xff] }
 0x278   :  { %1481 = vpow2.f32 %v832_v9  ;;  %v898_v9 = vld [vmem:[#allocation10 + $0x160] sm:$0xff] }
 0x283   :  { %v1480_v10 = vpop.eup %1479 }
 0x284   :  { %v834_v11 = vadd.f32 1.0, %v1480_v10  ;;  %v837_v14 = vmul.f32 -0.5, %v1480_v10  ;;  %v840_v18 = vand.u32 2147483647, %v1480_v10 }
 0x285   :  { %v1482_v12 = vpop.eup %1481 }
 0x286   :  { %v843_v13 = vadd.f32 1.0, %v1482_v12  ;;  %1483 = vlog2.f32 %v834_v11  ;;  %v846_v15 = vmul.f32 -0.5, %v1482_v12  ;;  %v838_v16 = vadd.f32 1.0, %v837_v14  ;;  %v891_v11 = vld [vmem:[#allocation10 + $0x128] sm:$0xff]  ;;  %v892_v14 = vld [vmem:[#allocation10 + $0x130] sm:$0xff] }
 0x287   :  { %v849_v20 = vand.u32 2147483647, %v1482_v12  ;;  %vm841_vm4 = vcmp.lt.f32.partialorder %v840_v18, 0.0004427343  ;;  %v884_v18 = vld [vmem:[#allocation10 + $0xf0] sm:$0xff] }
 0x288   :  { %1485 = vlog2.f32 %v843_v13  ;;  %v847_v17 = vadd.f32 1.0, %v846_v15  ;;  %v839_v23 = vmul.f32 %v1480_v10, %v838_v16  ;;  %v900_v10 = vld [vmem:[#allocation10 + $0x170] sm:$0xff]  ;;  %v890_v13 = vld [vmem:[#allocation10 + $0x120] sm:$0xff]  ;;  %v883_v15 = vld [vmem:[#allocation10 + $0xe8] sm:$0xff] }
 0x289   :  { %vm850_vm5 = vcmp.lt.f32.partialorder %v849_v20, 0.0004427343  ;;  %v885_v16 = vld [vmem:[#allocation10 + $0xf8] sm:$0xff] }
 0x28a   :  { %v848_v25 = vmul.f32 %v1482_v12, %v847_v17  ;;  %v893_v12 = vld [vmem:[#allocation10 + $0x138] sm:$0xff]  ;;  %v882_v17 = vld [vmem:[#allocation10 + $0xe0] sm:$0xff] }
 0x28b   :  { %v877_v20 = vld [vmem:[#allocation10 + $0xb8] sm:$0xff] }
 0x293   :  { %v1484_v19 = vpop.eup %1483 }
 0x294   :  { %v836_v21 = vmul.f32 0.6931472, %v1484_v19  ;;  %v875_v19 = vld [vmem:[#allocation10 + $0xa8] sm:$0xff] }
 0x295   :  { %v1486_v22 = vpop.eup %1485 }
 0x296   :  { %v845_v24 = vmul.f32 0.6931472, %v1486_v22  ;;  %v842_v26 = vsel %vm841_vm4, %v839_v23, %v836_v21  ;;  %v874_v21 = vld [vmem:[#allocation10 + $0xa0] sm:$0xff]  ;;  %v876_v22 = vld [vmem:[#allocation10 + $0xb0] sm:$0xff]  ;;  %v867_v23 = vld [vmem:[#allocation10 + $0x68] sm:$0xff] }
 0x297   :  { %v1701_v33 = vsel %vm826_vm7, %v822_v3, %v842_v26  ;;  %v907_v3 = vld [vmem:[#allocation10 + $0x1a8] sm:$0xff]  ;;  %v868_v26 = vld [vmem:[#allocation10 + $0x70] sm:$0xff] }
 0x298   :  { %v851_v27 = vsel %vm850_vm5, %v848_v25, %v845_v24  ;;  %v869_v24 = vld [vmem:[#allocation10 + $0x78] sm:$0xff]  ;;  %v866_v25 = vld [vmem:[#allocation10 + $0x60] sm:$0xff] }
 0x299   :  { %v853_v28 = vsel %vm827_vm6, %v824_v6, %v851_v27  ;;  %v908_v6 = vld [vmem:[#allocation10 + $0x1b0] sm:$0xff]  ;;  %v859_v27 = vld [vmem:[#allocation10 + $0x28] sm:$0xff] }
 0x29a   :  { %1216 = vmatprep.mubr.f32.mxu1 %v853_v28  ;;  %1287 = vmatprep.mubr.f32.mxu0 %v853_v28 }
 0x29b   :  { %1217 = vmatmul.mubr.f32.vlgmr.msra.gmra.mxu1 %v1701_v33  ;;  %1288 = vmatmul.mubr.f32.vlgmr.msra.gmra.mxu0 %v1701_v33 }
 0x29c   :  { %1295 = vmatpush1.msra.mxu1 %v978_v29  ;;  %1366 = vmatpush1.msra.mxu0 %v980_v30  ;;  %v858_v29 = vld [vmem:[#allocation10 + $0x20] sm:$0xff]  ;;  %v860_v30 = vld [vmem:[#allocation10 + $0x30] sm:$0xff] }
 0x29d   :  { %1296 = vmatprep.subr.mxu1 %v971_v35  ;;  %1358 = vmatprep.mubr.f32.mxu1 %v853_v28  ;;  %v1107_v35 = vld [vmem:[#allocation10 + $0x7e8] sm:$0xff] }
 0x29e   :  { %1367 = vmatprep.subr.mxu0 %v973_v36  ;;  %1429 = vmatprep.mubr.f32.mxu0 %v853_v28  ;;  %v861_v28 = vld [vmem:[#allocation10 + $0x38] sm:$0xff] }
 0x29f   :  { %1297 = vmatpush1.msra.mxu1 %v970_v37  ;;  %1368 = vmatpush1.msra.mxu0 %v972_v38  ;;  %v1109_v36 = vld [vmem:[#allocation10 + $0x7f8] sm:$0xff]  ;;  %v1106_v37 = vld [vmem:[#allocation10 + $0x7e0] sm:$0xff]  ;;  %v1108_v38 = vld [vmem:[#allocation10 + $0x7f0] sm:$0xff] }
 0x2a0   :  { %1298 = vmatprep.subr.mxu1 %v963_v39  ;;  %1369 = vmatprep.subr.mxu0 %v965_v40  ;;  %v1099_v39 = vld [vmem:[#allocation10 + $0x7a8] sm:$0xff]  ;;  %v1101_v40 = vld [vmem:[#allocation10 + $0x7b8] sm:$0xff] }
 0x2a1   :  { %1299 = vmatpush1.msra.mxu1 %v962_v41  ;;  %1370 = vmatpush1.msra.mxu0 %v964_v42  ;;  %v1098_v41 = vld [vmem:[#allocation10 + $0x7a0] sm:$0xff]  ;;  %v1100_v42 = vld [vmem:[#allocation10 + $0x7b0] sm:$0xff] }
 0x2a2   :  { %1300 = vmatprep.subr.mxu1 %v955_v43  ;;  %1371 = vmatprep.subr.mxu0 %v957_v44  ;;  %v1091_v43 = vld [vmem:[#allocation10 + $0x768] sm:$0xff]  ;;  %v1093_v44 = vld [vmem:[#allocation10 + $0x778] sm:$0xff] }
 0x2a3   :  { %1301 = vmatpush1.msra.mxu1 %v954_v45  ;;  %1372 = vmatpush1.msra.mxu0 %v956_v46  ;;  %v1090_v45 = vld [vmem:[#allocation10 + $0x760] sm:$0xff]  ;;  %v1092_v46 = vld [vmem:[#allocation10 + $0x770] sm:$0xff] }
 0x2a4   :  { %1302 = vmatprep.subr.mxu1 %v947_v47  ;;  %1373 = vmatprep.subr.mxu0 %v949_v48  ;;  %v1083_v47 = vld [vmem:[#allocation10 + $0x728] sm:$0xff]  ;;  %v1085_v48 = vld [vmem:[#allocation10 + $0x738] sm:$0xff] }
 0x2a5   :  { %1303 = vmatpush1.msra.mxu1 %v946_v49  ;;  %1374 = vmatpush1.msra.mxu0 %v948_v50  ;;  %v1082_v49 = vld [vmem:[#allocation10 + $0x720] sm:$0xff]  ;;  %v1084_v50 = vld [vmem:[#allocation10 + $0x730] sm:$0xff] }
 0x2a6   :  { %1304 = vmatprep.subr.mxu1 %v939_v51  ;;  %1375 = vmatprep.subr.mxu0 %v941_v52  ;;  %v1075_v51 = vld [vmem:[#allocation10 + $0x6e8] sm:$0xff]  ;;  %v1077_v52 = vld [vmem:[#allocation10 + $0x6f8] sm:$0xff] }
 0x2a7   :  { %1305 = vmatpush1.msra.mxu1 %v938_v53  ;;  %1376 = vmatpush1.msra.mxu0 %v940_v54  ;;  %v1074_v53 = vld [vmem:[#allocation10 + $0x6e0] sm:$0xff]  ;;  %v1076_v54 = vld [vmem:[#allocation10 + $0x6f0] sm:$0xff] }
 0x2a8   :  { %1306 = vmatprep.subr.mxu1 %v931_v55  ;;  %1377 = vmatprep.subr.mxu0 %v933_v56  ;;  %v1067_v55 = vld [vmem:[#allocation10 + $0x6a8] sm:$0xff]  ;;  %v1069_v56 = vld [vmem:[#allocation10 + $0x6b8] sm:$0xff] }
 0x2a9   :  { %1307 = vmatpush1.msra.mxu1 %v930_v57  ;;  %1378 = vmatpush1.msra.mxu0 %v932_v58  ;;  %v1066_v57 = vld [vmem:[#allocation10 + $0x6a0] sm:$0xff]  ;;  %v1068_v58 = vld [vmem:[#allocation10 + $0x6b0] sm:$0xff] }
 0x2aa   :  { %1308 = vmatprep.subr.mxu1 %v923_v59  ;;  %1379 = vmatprep.subr.mxu0 %v925_v60  ;;  %v1059_v59 = vld [vmem:[#allocation10 + $0x668] sm:$0xff]  ;;  %v1061_v60 = vld [vmem:[#allocation10 + $0x678] sm:$0xff] }
 0x2ab   :  { %1309 = vmatpush1.msra.mxu1 %v922_v61  ;;  %1380 = vmatpush1.msra.mxu0 %v924_v62  ;;  %v1058_v61 = vld [vmem:[#allocation10 + $0x660] sm:$0xff]  ;;  %v1060_v62 = vld [vmem:[#allocation10 + $0x670] sm:$0xff] }
 0x2ac   :  { %1310 = vmatprep.subr.mxu1 %v915_v63  ;;  %1381 = vmatprep.subr.mxu0 %v917_v0  ;;  %v1051_v63 = vld [vmem:[#allocation10 + $0x628] sm:$0xff]  ;;  %v1053_v0 = vld [vmem:[#allocation10 + $0x638] sm:$0xff] }
 0x2ad   :  { %1311 = vmatpush1.msra.mxu1 %v914_v1  ;;  %1382 = vmatpush1.msra.mxu0 %v916_v2  ;;  %v1050_v1 = vld [vmem:[#allocation10 + $0x620] sm:$0xff]  ;;  %v1052_v2 = vld [vmem:[#allocation10 + $0x630] sm:$0xff] }
 0x2ae   :  { %1312 = vmatprep.subr.mxu1 %v907_v3  ;;  %1383 = vmatprep.subr.mxu0 %v909_v4  ;;  %v1043_v3 = vld [vmem:[#allocation10 + $0x5e8] sm:$0xff]  ;;  %v1045_v4 = vld [vmem:[#allocation10 + $0x5f8] sm:$0xff] }
 0x2af   :  { %1313 = vmatpush1.msra.mxu1 %v906_v5  ;;  %1384 = vmatpush1.msra.mxu0 %v908_v6  ;;  %v1042_v5 = vld [vmem:[#allocation10 + $0x5e0] sm:$0xff]  ;;  %v1044_v6 = vld [vmem:[#allocation10 + $0x5f0] sm:$0xff] }
 0x2b0   :  { %1314 = vmatprep.subr.mxu1 %v899_v7  ;;  %1385 = vmatprep.subr.mxu0 %v901_v8  ;;  %v1035_v7 = vld [vmem:[#allocation10 + $0x5a8] sm:$0xff]  ;;  %v1037_v8 = vld [vmem:[#allocation10 + $0x5b8] sm:$0xff] }
 0x2b1   :  { %1315 = vmatpush1.msra.mxu1 %v898_v9  ;;  %1386 = vmatpush1.msra.mxu0 %v900_v10  ;;  %v1034_v9 = vld [vmem:[#allocation10 + $0x5a0] sm:$0xff]  ;;  %v1036_v10 = vld [vmem:[#allocation10 + $0x5b0] sm:$0xff] }
 0x2b2   :  { %1316 = vmatprep.subr.mxu1 %v891_v11  ;;  %1387 = vmatprep.subr.mxu0 %v893_v12  ;;  %v1027_v11 = vld [vmem:[#allocation10 + $0x568] sm:$0xff]  ;;  %v1029_v12 = vld [vmem:[#allocation10 + $0x578] sm:$0xff] }
 0x2b3   :  { %1317 = vmatpush1.msra.mxu1 %v890_v13  ;;  %1388 = vmatpush1.msra.mxu0 %v892_v14  ;;  %v1026_v13 = vld [vmem:[#allocation10 + $0x560] sm:$0xff]  ;;  %v1028_v14 = vld [vmem:[#allocation10 + $0x570] sm:$0xff] }
 0x2b4   :  { %1318 = vmatprep.subr.mxu1 %v883_v15  ;;  %1389 = vmatprep.subr.mxu0 %v885_v16  ;;  %v1019_v15 = vld [vmem:[#allocation10 + $0x528] sm:$0xff]  ;;  %v1021_v16 = vld [vmem:[#allocation10 + $0x538] sm:$0xff] }
 0x2b5   :  { %1319 = vmatpush1.msra.mxu1 %v882_v17  ;;  %1390 = vmatpush1.msra.mxu0 %v884_v18  ;;  %v1018_v17 = vld [vmem:[#allocation10 + $0x520] sm:$0xff]  ;;  %v1020_v18 = vld [vmem:[#allocation10 + $0x530] sm:$0xff] }
 0x2b6   :  { %1320 = vmatprep.subr.mxu1 %v875_v19  ;;  %1391 = vmatprep.subr.mxu0 %v877_v20  ;;  %v1011_v19 = vld [vmem:[#allocation10 + $0x4e8] sm:$0xff]  ;;  %v1013_v20 = vld [vmem:[#allocation10 + $0x4f8] sm:$0xff] }
 0x2b7   :  { %1321 = vmatpush1.msra.mxu1 %v874_v21  ;;  %1392 = vmatpush1.msra.mxu0 %v876_v22  ;;  %v1010_v21 = vld [vmem:[#allocation10 + $0x4e0] sm:$0xff]  ;;  %v1012_v22 = vld [vmem:[#allocation10 + $0x4f0] sm:$0xff] }
 0x2b8   :  { %1322 = vmatprep.subr.mxu1 %v867_v23  ;;  %1393 = vmatprep.subr.mxu0 %v869_v24  ;;  %v1003_v23 = vld [vmem:[#allocation10 + $0x4a8] sm:$0xff]  ;;  %v1005_v24 = vld [vmem:[#allocation10 + $0x4b8] sm:$0xff] }
 0x2b9   :  { %1323 = vmatpush1.msra.mxu1 %v866_v25  ;;  %1394 = vmatpush1.msra.mxu0 %v868_v26  ;;  %v1002_v25 = vld [vmem:[#allocation10 + $0x4a0] sm:$0xff]  ;;  %v1004_v26 = vld [vmem:[#allocation10 + $0x4b0] sm:$0xff] }
 0x2ba   :  { %1324 = vmatprep.subr.mxu1 %v859_v27  ;;  %1395 = vmatprep.subr.mxu0 %v861_v28  ;;  %v995_v27 = vld [vmem:[#allocation10 + $0x468] sm:$0xff]  ;;  %v997_v28 = vld [vmem:[#allocation10 + $0x478] sm:$0xff] }
 0x2bb   :  { %1325 = vmatpush1.msra.mxu1 %v858_v29  ;;  %1396 = vmatpush1.msra.mxu0 %v860_v30  ;;  %v994_v29 = vld [vmem:[#allocation10 + $0x460] sm:$0xff]  ;;  %v996_v30 = vld [vmem:[#allocation10 + $0x470] sm:$0xff] }
 0x2bc   :  { %1326 = vmatprep.subr.mxu1 %v1107_v35  ;;  %1397 = vmatprep.subr.mxu0 %v1109_v36  ;;  %v987_v35 = vld [vmem:[#allocation10 + $0x428] sm:$0xff]  ;;  %v989_v36 = vld [vmem:[#allocation10 + $0x438] sm:$0xff] }
 0x2bd   :  { %1327 = vmatpush2.msra.mxu1 %v1106_v37  ;;  %1398 = vmatpush2.msra.mxu0 %v1108_v38  ;;  %v986_v37 = vld [vmem:[#allocation10 + $0x420] sm:$0xff]  ;;  %v988_v38 = vld [vmem:[#allocation10 + $0x430] sm:$0xff] }
 0x2be   :  { %1328 = vmatprep.subr.mxu1 %v1099_v39  ;;  %1399 = vmatprep.subr.mxu0 %v1101_v40  ;;  %v1122_v39 = vsub.s32 2, %v1686_v31  ;;  %v1110_v40 = vld [vmem:[%s1727_s6] sm:$0xff]  ;;  %s1624_s6 = smov [#allocation11]  }
 0x2bf   :  { %1329 = vmatpush2.msra.mxu1 %v1098_v41  ;;  %1400 = vmatpush2.msra.mxu0 %v1100_v42  ;;  %v1126_v41 = vsub.s32 3, %v1686_v31  ;;  %v1115_v42 = vrot.slane %v1110_v40, %v1689_v32  ;;  %v1138_v32 = vsub.s32 6, %v1686_v31  ;;  %s1450_s28 = sshll.u32 %s1624_s6, 4  ;;  %s1451_s28 = int_to_ptr.vmem [resolvable:$true] %s1450_s28 }
 0x2c0   :  { %1330 = vmatprep.subr.mxu1 %v1091_v43  ;;  %1401 = vmatprep.subr.mxu0 %v1093_v44  ;;  %v1123_v43 = vrot.slane %v1110_v40, %v1122_v39  ;;  %v1119_v44 = vrot.slane %v1110_v40, %v1695_v34  ;;  %v1142_v34 = vsub.s32 7, %v1686_v31  ;;  %s1587_s29 = scalar_lea.vmem %s1451_s28, 1024  ;;  %p1592_p12 = scmp.lt.s32.totalorder %s1451_s28, %s1451_s28 }
 0x2c1   :  { %1331 = vmatpush2.msra.mxu1 %v1090_v45  ;;  %1402 = vmatpush2.msra.mxu0 %v1092_v46  ;;  %v1127_v45 = vrot.slane %v1110_v40, %v1126_v41  ;;  %p1588_p11 = scmp.ne.s32.totalorder %s1451_s28, %s1587_s29  ;;  %p1593_p13 = scmp.lt.s32.totalorder %s1587_s29, %s1587_s29 }
 0x2c2   :  { %1332 = vmatprep.subr.mxu1 %v1083_v47  ;;  %1403 = vmatprep.subr.mxu0 %v1085_v48 }
 0x2c3   :  { %1333 = vmatpush2.msra.mxu1 %v1082_v49  ;;  %1404 = vmatpush2.msra.mxu0 %v1084_v50  ;;  %p1594_p0 = por %p1593_p13, %p1592_p12 }
 0x2c4   :  { %1334 = vmatprep.subr.mxu1 %v1075_v51  ;;  %1405 = vmatprep.subr.mxu0 %v1077_v52 }
 0x2c5   :  { %1335 = vmatpush2.msra.mxu1 %v1074_v53  ;;  %1406 = vmatpush2.msra.mxu0 %v1076_v54  ;;  %v1130_v53 = vsub.s32 4, %v1686_v31  ;;  %v1134_v54 = vsub.s32 5, %v1686_v31  ;;  %p1595_p1 = pnand %p1594_p0, %p1588_p11 }
 0x2c6   :  { %1336 = vmatprep.subr.mxu1 %v1067_v55  ;;  %1407 = vmatprep.subr.mxu0 %v1069_v56  ;;  %v1139_v56 = vrot.slane %v1110_v40, %v1138_v32 }
 0x2c7   :  { %1337 = vmatpush2.msra.mxu1 %v1066_v57  ;;  %1408 = vmatpush2.msra.mxu0 %v1068_v58  ;;  %v1131_v55 = vrot.slane %v1110_v40, %v1130_v53  ;;  %v1135_v57 = vrot.slane %v1110_v40, %v1134_v54  ;;  %v1143_v58 = vrot.slane %v1110_v40, %v1142_v34 }
 0x2c8   :  { %1338 = vmatprep.subr.mxu1 %v1059_v59  ;;  %1409 = vmatprep.subr.mxu0 %v1061_v60 }
 0x2c9   :  { %1339 = vmatpush2.msra.mxu1 %v1058_v61  ;;  %1410 = vmatpush2.msra.mxu0 %v1060_v62 }
 0x2ca   :  { %1340 = vmatprep.subr.mxu1 %v1051_v63  ;;  %1411 = vmatprep.subr.mxu0 %v1053_v0 }
 0x2cb   :  { %1341 = vmatpush2.msra.mxu1 %v1050_v1  ;;  %1412 = vmatpush2.msra.mxu0 %v1052_v2 }
 0x2cc   :  { %1342 = vmatprep.subr.mxu1 %v1043_v3  ;;  %1413 = vmatprep.subr.mxu0 %v1045_v4 }
 0x2cd   :  { %1343 = vmatpush2.msra.mxu1 %v1042_v5  ;;  %1414 = vmatpush2.msra.mxu0 %v1044_v6 }
 0x2ce   :  { %1344 = vmatprep.subr.mxu1 %v1035_v7  ;;  %1415 = vmatprep.subr.mxu0 %v1037_v8 }
 0x2cf   :  { %1345 = vmatpush2.msra.mxu1 %v1034_v9  ;;  %1416 = vmatpush2.msra.mxu0 %v1036_v10 }
 0x2d0   :  { %1346 = vmatprep.subr.mxu1 %v1027_v11  ;;  %1417 = vmatprep.subr.mxu0 %v1029_v12 }
 0x2d1   :  { %1347 = vmatpush2.msra.mxu1 %v1026_v13  ;;  %1418 = vmatpush2.msra.mxu0 %v1028_v14 }
 0x2d2   :  { %1348 = vmatprep.subr.mxu1 %v1019_v15  ;;  %1419 = vmatprep.subr.mxu0 %v1021_v16 }
 0x2d3   :  { %1349 = vmatpush2.msra.mxu1 %v1018_v17  ;;  %1420 = vmatpush2.msra.mxu0 %v1020_v18 }
 0x2d4   :  { %1350 = vmatprep.subr.mxu1 %v1011_v19  ;;  %1421 = vmatprep.subr.mxu0 %v1013_v20 }
 0x2d5   :  { %1351 = vmatpush2.msra.mxu1 %v1010_v21  ;;  %1422 = vmatpush2.msra.mxu0 %v1012_v22 }
 0x2d6   :  { %1352 = vmatprep.subr.mxu1 %v1003_v23  ;;  %1423 = vmatprep.subr.mxu0 %v1005_v24 }
 0x2d7   :  { %1353 = vmatpush2.msra.mxu1 %v1002_v25  ;;  %1424 = vmatpush2.msra.mxu0 %v1004_v26 }
 0x2d8   :  { %1354 = vmatprep.subr.mxu1 %v995_v27  ;;  %1425 = vmatprep.subr.mxu0 %v997_v28 }
 0x2d9   :  { %1355 = vmatpush2.msra.mxu1 %v994_v29  ;;  %1426 = vmatpush2.msra.mxu0 %v996_v30 }
 0x2da   :  { %1356 = vmatprep.subr.mxu1 %v987_v35  ;;  %1427 = vmatprep.subr.mxu0 %v989_v36 }
 0x2db   :  { %1357 = vmatpush2.msra.mxu1 %v986_v37  ;;  %1428 = vmatpush2.msra.mxu0 %v988_v38 }
 0x2dc   :  { %1359 = vmatmul.mubr.f32.vlgmr.msra.gmra.mxu1 %v1701_v33  ;;  %1430 = vmatmul.mubr.f32.vlgmr.msra.gmra.mxu0 %v1701_v33 }
 0x35b   :  { %v1218_v46 = vpop.f32.mrf.mxu1  ;;  %v1289_v47 = vpop.f32.mrf.mxu0 }
 0x35c   :  { %v1219_v48 = vadd.f32 %v1218_v46, %v1115_v42  ;;  %v1290_v49 = vadd.f32 %v1289_v47, %v1123_v43 }
 0x35d   :  { %v1220_v50 = vpop.f32.mrf.mxu1  ;;  %v1291_v33 = vpop.f32.mrf.mxu0 }
 0x35e   :  { %1436 = vst [vmem:[#allocation11] sm:$0xff] %v1219_v48  ;;  %1438 = vst [vmem:[#allocation11 + $0x10] sm:$0xff] %v1290_v49  ;;  %v1221_v51 = vadd.f32 %v1220_v50, %v1119_v44  ;;  %v1292_v52 = vadd.f32 %v1291_v33, %v1127_v45 }
 0x360   :  { %1437 = vst [vmem:[#allocation11 + $0x8] sm:$0xff] %v1221_v51  ;;  %1439 = vst [vmem:[#allocation11 + $0x18] sm:$0xff] %v1292_v52 }
 0x39c   :  { %v1360_v59 = vpop.f32.mrf.mxu1  ;;  %v1431_v60 = vpop.f32.mrf.mxu0 }
 0x39d   :  { %v1361_v61 = vadd.f32 %v1360_v59, %v1131_v55  ;;  %v1432_v62 = vadd.f32 %v1431_v60, %v1139_v56 }
 0x39e   :  { %v1362_v63 = vpop.f32.mrf.mxu1  ;;  %v1433_v0 = vpop.f32.mrf.mxu0 }
 0x39f   :  { %1440 = vst [vmem:[#allocation11 + $0x20] sm:$0xff] %v1361_v61  ;;  %1442 = vst [vmem:[#allocation11 + $0x30] sm:$0xff] %v1432_v62  ;;  %v1363_v1 = vadd.f32 %v1362_v63, %v1135_v57  ;;  %v1434_v2 = vadd.f32 %v1433_v0, %v1143_v58 }
 0x3a1   :  { %1441 = vst [vmem:[#allocation11 + $0x28] sm:$0xff] %v1363_v1  ;;  %1443 = vst [vmem:[#allocation11 + $0x38] sm:$0xff] %v1434_v2 }
 0x3a2   :  { %1598 = shalt.err (!%p1595_p1)
}
 0x3a3   :  { %1453 = dma.vmem_to_hbm [thread:$0]  %s1451_s28, 1024, %s1728_s7, [#allocation4]  }
 0x3a4   :  { %1613 = dma.done.wait [#allocation4], 1024  }
 0x3a5   :  { %1614 = vsyncadd [#allocation4], 4294966272 }
 0x3a6   :  { %1457 = vsyncpa [#allocation3], 1 }
 0x3a7   :  { %1458 = vsyncpa [#allocation6], 1 }
 0x3a8   :  { %1459 = vsyncpa [#allocation9], 1 }
 0x3a9   :  { %1460 = vsyncpa [#allocation4], 1 }

</bundles_post_ra>
